<compile_context>
chip_gen: v7x
topology: tpu7x:2x2x1
jax: 0.10.0
libtpu: 0.0.40
codegen_flags: <defaults>
</compile_context>

<pallas_src>
import jax
import jax.numpy as jnp
from jax.experimental import pallas as pl
from jax.experimental.pallas import tpu as pltpu

LN_EPS = 1e-5  # torch.nn.LayerNorm default


def layernormnet_kernel(x_ref, w1_ref, w2_ref, w3_ref, vec_ref, o_ref):
    d_h = w1_ref.shape[1]
    d_out = w3_ref.shape[1]
    inv_h = 1.0 / d_h

    # Packed per-feature vectors (one DMA): rows are
    # [b1, g1, be1, b2, g2, be2, b3(padded), 0].
    b1 = vec_ref[0:1, :d_h]
    g1 = vec_ref[1:2, :d_h]
    be1 = vec_ref[2:3, :d_h]
    b2 = vec_ref[3:4, :d_h]
    g2 = vec_ref[4:5, :d_h]
    be2 = vec_ref[5:6, :d_h]
    b3 = vec_ref[6:7, :d_out]

    # fc1: bf16 x bf16 -> f32 accumulate on the MXU.
    h = jnp.dot(x_ref[...], w1_ref[...],
                preferred_element_type=jnp.float32) + b1

    # ln1 — fused single-pass statistics (two independent XLU reductions).
    s1 = jnp.sum(h, axis=-1, keepdims=True)
    s2 = jnp.sum(h * h, axis=-1, keepdims=True)
    mean = s1 * inv_h
    var = s2 * inv_h - mean * mean
    h = (h - mean) * jax.lax.rsqrt(var + LN_EPS) * g1 + be1

    # TODO(synk): dropout is identity here (eval-mode forward); a training-mode
    # kernel would draw masks with pltpu.prng_seed + pltpu.stateful_bernoulli.
    h = jnp.maximum(h, 0.0)  # relu

    # fc2 (activation cast to bf16 for the MXU, f32 accumulate).
    h = jnp.dot(h.astype(jnp.bfloat16), w2_ref[...],
                preferred_element_type=jnp.float32) + b2

    # ln2 — fused statistics.
    s1 = jnp.sum(h, axis=-1, keepdims=True)
    s2 = jnp.sum(h * h, axis=-1, keepdims=True)
    mean = s1 * inv_h
    var = s2 * inv_h - mean * mean
    h = (h - mean) * jax.lax.rsqrt(var + LN_EPS) * g2 + be2
    h = jnp.maximum(h, 0.0)  # relu

    # fc3: write straight into the output ref.
    o_ref[...] = (jnp.dot(h.astype(jnp.bfloat16), w3_ref[...],
                          preferred_element_type=jnp.float32)
                  + b3).astype(o_ref.dtype)


def layernormnet_forward(x, params, *, block_rows=128):
    """Pallas implementation of LayerNormNet.forward(x) (inference)."""
    B, D_in = x.shape
    D_h = params["w1"].shape[1]
    D_out = params["w3"].shape[1]
    D_max = max(D_h, D_out)

    # bf16 weights: halves HBM->VMEM traffic, native MXU bf16 path.
    w1 = params["w1"].astype(jnp.bfloat16)
    w2 = params["w2"].astype(jnp.bfloat16)
    w3 = params["w3"].astype(jnp.bfloat16)

    # Pack the 8 small per-feature vectors into one (8, D_max) f32 array.
    def pad_row(v):
        v = v.astype(jnp.float32)
        return jnp.pad(v, ((0, 0), (0, D_max - v.shape[1])))

    vec = jnp.concatenate(
        [pad_row(params["b1"]), pad_row(params["g1"]), pad_row(params["be1"]),
         pad_row(params["b2"]), pad_row(params["g2"]), pad_row(params["be2"]),
         pad_row(params["b3"]), jnp.zeros((1, D_max), jnp.float32)],
        axis=0)  # (8, D_max)

    # Batch tiling: keep the row-block a multiple of 8 (sublane) and pad B up.
    tm = min(block_rows, max(8, ((B + 7) // 8) * 8))
    B_pad = ((B + tm - 1) // tm) * tm
    if B_pad != B:
        x = jnp.pad(x, ((0, B_pad - B), (0, 0)))
    x = x.astype(jnp.bfloat16)

    grid = (B_pad // tm,)

    grid_spec = pltpu.PrefetchScalarGridSpec(
        num_scalar_prefetch=0,
        grid=grid,
        in_specs=[
            pl.BlockSpec((tm, D_in), lambda i: (i, 0)),    # x (pipelined)
            pl.BlockSpec((D_in, D_h), lambda i: (0, 0)),   # w1 (VMEM-resident)
            pl.BlockSpec((D_h, D_h), lambda i: (0, 0)),    # w2 (VMEM-resident)
            pl.BlockSpec((D_h, D_out), lambda i: (0, 0)),  # w3 (VMEM-resident)
            pl.BlockSpec((8, D_max), lambda i: (0, 0)),    # packed vectors
        ],
        out_specs=pl.BlockSpec((tm, D_out), lambda i: (i, 0)),
    )

    out = pl.pallas_call(
        layernormnet_kernel,
        out_shape=jax.ShapeDtypeStruct((B_pad, D_out), jnp.float32),
        grid_spec=grid_spec,
        compiler_params=pltpu.CompilerParams(
            # Batch blocks are independent -> shard across v7x's two TCs.
            dimension_semantics=("parallel",)),
    )(x, w1, w2, w3, vec)

    return out[:B]


def layernormnet_reference(x, params):
    """Pure-JAX f32 reference with identical semantics (for verification)."""
    def ln(h, g, b):
        mean = jnp.mean(h, axis=-1, keepdims=True)
        var = jnp.mean((h - mean) ** 2, axis=-1, keepdims=True)
        return (h - mean) * jax.lax.rsqrt(var + LN_EPS) * g + b

    h = x @ params["w1"] + params["b1"]
    h = jnp.maximum(ln(h, params["g1"], params["be1"]), 0.0)
    h = h @ params["w2"] + params["b2"]
    h = jnp.maximum(ln(h, params["g2"], params["be2"]), 0.0)
    return h @ params["w3"] + params["b3"]


def init_params(key, d_in, d_h, d_out):
    """Deterministic, torch.nn.Linear-style uniform init (synthetic weights)."""
    ks = jax.random.split(key, 10)
    l1, l2, l3 = 1.0 / jnp.sqrt(d_in), 1.0 / jnp.sqrt(d_h), 1.0 / jnp.sqrt(d_h)
    return {
        "w1": jax.random.uniform(ks[0], (d_in, d_h), jnp.float32, -l1, l1),
        "b1": jax.random.uniform(ks[1], (1, d_h), jnp.float32, -l1, l1),
        "g1": 1.0 + 0.1 * jax.random.normal(ks[2], (1, d_h), jnp.float32),
        "be1": 0.1 * jax.random.normal(ks[3], (1, d_h), jnp.float32),
        "w2": jax.random.uniform(ks[4], (d_h, d_h), jnp.float32, -l2, l2),
        "b2": jax.random.uniform(ks[5], (1, d_h), jnp.float32, -l2, l2),
        "g2": 1.0 + 0.1 * jax.random.normal(ks[6], (1, d_h), jnp.float32),
        "be2": 0.1 * jax.random.normal(ks[7], (1, d_h), jnp.float32),
        "w3": jax.random.uniform(ks[8], (d_h, d_out), jnp.float32, -l3, l3),
        "b3": jax.random.uniform(ks[9], (1, d_out), jnp.float32, -l3, l3),
    }


if __name__ == "__main__":
    # Small shapes consistent with the module: feature_dim = node_h_dim[0],
    # hidden_dim / out_dim from the contrastive-learning config, lane-aligned.
    # B=256 exercises the batched ("parallel") grid with two row-blocks.
    B, D_IN, D_HID, D_OUT = 256, 128, 256, 128

    key = jax.random.PRNGKey(0)
    kx, kp = jax.random.split(key)
    x = jax.random.normal(kx, (B, D_IN), jnp.float32)
    params = init_params(kp, D_IN, D_HID, D_OUT)

    y = jax.block_until_ready(layernormnet_forward(x, params))
    y_ref = jax.block_until_ready(layernormnet_reference(x, params))

    assert y.shape == (B, D_OUT)
    # bf16 weights/activations in the kernel vs f32 reference -> loosened tol.
    assert jnp.allclose(y, y_ref, atol=3e-2, rtol=3e-2), "mismatch vs reference"

    print("KERNEL_OK")
</pallas_src>

<mosaic_0001>
module attributes {stable_mosaic.version = 11 : i64} {
  func.func @layernormnet_kernel(%arg0: i32, %arg1: memref<128x128xbf16, #tpu.memory_space<vmem>>, %arg2: memref<128x256xbf16, #tpu.memory_space<vmem>>, %arg3: memref<256x256xbf16, #tpu.memory_space<vmem>>, %arg4: memref<256x128xbf16, #tpu.memory_space<vmem>>, %arg5: memref<8x256xf32, #tpu.memory_space<vmem>>, %arg6: memref<128x128xf32, #tpu.memory_space<vmem>>) attributes {dimension_semantics = [#tpu.dimension_semantics<parallel>], iteration_bounds = array<i64: 2>, scalar_prefetch = 0 : i64, scratch_operands = 0 : i64, tpu.core_type = #tpu.core_type<tc>, window_params = [{transform_indices = @transform_0, window_bounds = array<i64: 128, 128>}, {pipeline_mode = #tpu.pipeline_mode<synchronous>, transform_indices = @transform_1, window_bounds = array<i64: 128, 256>}, {pipeline_mode = #tpu.pipeline_mode<synchronous>, transform_indices = @transform_2, window_bounds = array<i64: 256, 256>}, {pipeline_mode = #tpu.pipeline_mode<synchronous>, transform_indices = @transform_3, window_bounds = array<i64: 256, 128>}, {pipeline_mode = #tpu.pipeline_mode<synchronous>, transform_indices = @transform_4, window_bounds = array<i64: 8, 256>}, {transform_indices = @transform_5, window_bounds = array<i64: 128, 128>}]} {
    %c0 = arith.constant 0 : index
    %c0_0 = arith.constant 0 : index
    %0 = vector.load %arg5[%c0, %c0_0] : memref<8x256xf32, #tpu.memory_space<vmem>>, vector<1x256xf32>
    %c1 = arith.constant 1 : index
    %c0_1 = arith.constant 0 : index
    %1 = vector.load %arg5[%c1, %c0_1] : memref<8x256xf32, #tpu.memory_space<vmem>>, vector<1x256xf32>
    %c2 = arith.constant 2 : index
    %c0_2 = arith.constant 0 : index
    %2 = vector.load %arg5[%c2, %c0_2] : memref<8x256xf32, #tpu.memory_space<vmem>>, vector<1x256xf32>
    %c3 = arith.constant 3 : index
    %c0_3 = arith.constant 0 : index
    %3 = vector.load %arg5[%c3, %c0_3] : memref<8x256xf32, #tpu.memory_space<vmem>>, vector<1x256xf32>
    %c4 = arith.constant 4 : index
    %c0_4 = arith.constant 0 : index
    %4 = vector.load %arg5[%c4, %c0_4] : memref<8x256xf32, #tpu.memory_space<vmem>>, vector<1x256xf32>
    %c5 = arith.constant 5 : index
    %c0_5 = arith.constant 0 : index
    %5 = vector.load %arg5[%c5, %c0_5] : memref<8x256xf32, #tpu.memory_space<vmem>>, vector<1x256xf32>
    %c6 = arith.constant 6 : index
    %c0_6 = arith.constant 0 : index
    %6 = vector.load %arg5[%c6, %c0_6] : memref<8x256xf32, #tpu.memory_space<vmem>>, vector<1x128xf32>
    %c0_7 = arith.constant 0 : index
    %c0_8 = arith.constant 0 : index
    %7 = vector.load %arg1[%c0_7, %c0_8] : memref<128x128xbf16, #tpu.memory_space<vmem>>, vector<128x128xbf16>
    %c0_9 = arith.constant 0 : index
    %c0_10 = arith.constant 0 : index
    %8 = vector.load %arg2[%c0_9, %c0_10] : memref<128x256xbf16, #tpu.memory_space<vmem>>, vector<128x256xbf16>
    %cst = arith.constant dense<0.000000e+00> : vector<128x256xf32>
    %9 = tpu.matmul %7, %8, %cst {dimension_numbers = #tpu.dot_dimension_numbers<[1], [0], [0], [1], [0, 0, 1, 1], [], []>} : vector<128x128xbf16>, vector<128x256xbf16>, vector<128x256xf32> -> vector<128x256xf32>
    %10 = vector.broadcast %0 : vector<1x256xf32> to vector<128x256xf32>
    %11 = arith.addf %9, %10 : vector<128x256xf32>
    %cst_11 = arith.constant dense<0.000000e+00> : vector<128xf32>
    %12 = vector.multi_reduction <add>, %11, %cst_11 [1] : vector<128x256xf32> to vector<128xf32>
    %13 = vector.shape_cast %12 : vector<128xf32> to vector<128x1xf32>
    %14 = arith.mulf %11, %11 : vector<128x256xf32>
    %cst_12 = arith.constant dense<0.000000e+00> : vector<128xf32>
    %15 = vector.multi_reduction <add>, %14, %cst_12 [1] : vector<128x256xf32> to vector<128xf32>
    %16 = vector.shape_cast %15 : vector<128xf32> to vector<128x1xf32>
    %cst_13 = arith.constant 3.906250e-03 : f32
    %17 = vector.broadcast %cst_13 : f32 to vector<128x1xf32>
    %18 = arith.mulf %13, %17 : vector<128x1xf32>
    %cst_14 = arith.constant 3.906250e-03 : f32
    %19 = vector.broadcast %cst_14 : f32 to vector<128x1xf32>
    %20 = arith.mulf %16, %19 : vector<128x1xf32>
    %21 = arith.mulf %18, %18 : vector<128x1xf32>
    %22 = arith.subf %20, %21 : vector<128x1xf32>
    %23 = vector.broadcast %18 : vector<128x1xf32> to vector<128x256xf32>
    %24 = arith.subf %11, %23 : vector<128x256xf32>
    %cst_15 = arith.constant 9.99999974E-6 : f32
    %25 = vector.broadcast %cst_15 : f32 to vector<128x1xf32>
    %26 = arith.addf %22, %25 : vector<128x1xf32>
    %27 = math.rsqrt %26 : vector<128x1xf32>
    %28 = vector.broadcast %27 : vector<128x1xf32> to vector<128x256xf32>
    %29 = arith.mulf %24, %28 : vector<128x256xf32>
    %30 = vector.broadcast %1 : vector<1x256xf32> to vector<128x256xf32>
    %31 = arith.mulf %29, %30 : vector<128x256xf32>
    %32 = vector.broadcast %2 : vector<1x256xf32> to vector<128x256xf32>
    %33 = arith.addf %31, %32 : vector<128x256xf32>
    %cst_16 = arith.constant 0.000000e+00 : f32
    %34 = vector.broadcast %cst_16 : f32 to vector<128x256xf32>
    %35 = arith.maximumf %33, %34 : vector<128x256xf32>
    %36 = arith.truncf %35 : vector<128x256xf32> to vector<128x256xbf16>
    %c0_17 = arith.constant 0 : index
    %c0_18 = arith.constant 0 : index
    %37 = vector.load %arg3[%c0_17, %c0_18] : memref<256x256xbf16, #tpu.memory_space<vmem>>, vector<256x256xbf16>
    %cst_19 = arith.constant dense<0.000000e+00> : vector<128x256xf32>
    %38 = tpu.matmul %36, %37, %cst_19 {dimension_numbers = #tpu.dot_dimension_numbers<[1], [0], [0], [1], [0, 0, 1, 1], [], []>} : vector<128x256xbf16>, vector<256x256xbf16>, vector<128x256xf32> -> vector<128x256xf32>
    %39 = vector.broadcast %3 : vector<1x256xf32> to vector<128x256xf32>
    %40 = arith.addf %38, %39 : vector<128x256xf32>
    %cst_20 = arith.constant dense<0.000000e+00> : vector<128xf32>
    %41 = vector.multi_reduction <add>, %40, %cst_20 [1] : vector<128x256xf32> to vector<128xf32>
    %42 = vector.shape_cast %41 : vector<128xf32> to vector<128x1xf32>
    %43 = arith.mulf %40, %40 : vector<128x256xf32>
    %cst_21 = arith.constant dense<0.000000e+00> : vector<128xf32>
    %44 = vector.multi_reduction <add>, %43, %cst_21 [1] : vector<128x256xf32> to vector<128xf32>
    %45 = vector.shape_cast %44 : vector<128xf32> to vector<128x1xf32>
    %cst_22 = arith.constant 3.906250e-03 : f32
    %46 = vector.broadcast %cst_22 : f32 to vector<128x1xf32>
    %47 = arith.mulf %42, %46 : vector<128x1xf32>
    %cst_23 = arith.constant 3.906250e-03 : f32
    %48 = vector.broadcast %cst_23 : f32 to vector<128x1xf32>
    %49 = arith.mulf %45, %48 : vector<128x1xf32>
    %50 = arith.mulf %47, %47 : vector<128x1xf32>
    %51 = arith.subf %49, %50 : vector<128x1xf32>
    %52 = vector.broadcast %47 : vector<128x1xf32> to vector<128x256xf32>
    %53 = arith.subf %40, %52 : vector<128x256xf32>
    %cst_24 = arith.constant 9.99999974E-6 : f32
    %54 = vector.broadcast %cst_24 : f32 to vector<128x1xf32>
    %55 = arith.addf %51, %54 : vector<128x1xf32>
    %56 = math.rsqrt %55 : vector<128x1xf32>
    %57 = vector.broadcast %56 : vector<128x1xf32> to vector<128x256xf32>
    %58 = arith.mulf %53, %57 : vector<128x256xf32>
    %59 = vector.broadcast %4 : vector<1x256xf32> to vector<128x256xf32>
    %60 = arith.mulf %58, %59 : vector<128x256xf32>
    %61 = vector.broadcast %5 : vector<1x256xf32> to vector<128x256xf32>
    %62 = arith.addf %60, %61 : vector<128x256xf32>
    %cst_25 = arith.constant 0.000000e+00 : f32
    %63 = vector.broadcast %cst_25 : f32 to vector<128x256xf32>
    %64 = arith.maximumf %62, %63 : vector<128x256xf32>
    %65 = arith.truncf %64 : vector<128x256xf32> to vector<128x256xbf16>
    %c0_26 = arith.constant 0 : index
    %c0_27 = arith.constant 0 : index
    %66 = vector.load %arg4[%c0_26, %c0_27] : memref<256x128xbf16, #tpu.memory_space<vmem>>, vector<256x128xbf16>
    %cst_28 = arith.constant dense<0.000000e+00> : vector<128x128xf32>
    %67 = tpu.matmul %65, %66, %cst_28 {dimension_numbers = #tpu.dot_dimension_numbers<[1], [0], [0], [1], [0, 0, 1, 1], [], []>} : vector<128x256xbf16>, vector<256x128xbf16>, vector<128x128xf32> -> vector<128x128xf32>
    %68 = vector.broadcast %6 : vector<1x128xf32> to vector<128x128xf32>
    %69 = arith.addf %67, %68 : vector<128x128xf32>
    %c0_29 = arith.constant 0 : index
    %c0_30 = arith.constant 0 : index
    %70 = vector.load %arg6[%c0_29, %c0_30] : memref<128x128xf32, #tpu.memory_space<vmem>>, vector<128x128xf32>
    tpu.vector_store %arg6[%c0_29, %c0_30], %69 {strides = array<i32>} : memref<128x128xf32, #tpu.memory_space<vmem>>, vector<128x128xf32>,
    return
  }
  func.func @transform_0(%arg0: i32) -> (i32, i32) {
    %c0_i32 = arith.constant 0 : i32
    %c0_i32_0 = arith.constant 0 : i32
    return %arg0, %c0_i32 : i32, i32
  }
  func.func @transform_1(%arg0: i32) -> (i32, i32) {
    %c0_i32 = arith.constant 0 : i32
    %c0_i32_0 = arith.constant 0 : i32
    %c0_i32_1 = arith.constant 0 : i32
    return %c0_i32, %c0_i32_0 : i32, i32
  }
  func.func @transform_2(%arg0: i32) -> (i32, i32) {
    %c0_i32 = arith.constant 0 : i32
    %c0_i32_0 = arith.constant 0 : i32
    %c0_i32_1 = arith.constant 0 : i32
    return %c0_i32, %c0_i32_0 : i32, i32
  }
  func.func @transform_3(%arg0: i32) -> (i32, i32) {
    %c0_i32 = arith.constant 0 : i32
    %c0_i32_0 = arith.constant 0 : i32
    %c0_i32_1 = arith.constant 0 : i32
    return %c0_i32, %c0_i32_0 : i32, i32
  }
  func.func @transform_4(%arg0: i32) -> (i32, i32) {
    %c0_i32 = arith.constant 0 : i32
    %c0_i32_0 = arith.constant 0 : i32
    %c0_i32_1 = arith.constant 0 : i32
    return %c0_i32, %c0_i32_0 : i32, i32
  }
  func.func @transform_5(%arg0: i32) -> (i32, i32) {
    %c0_i32 = arith.constant 0 : i32
    %c0_i32_0 = arith.constant 0 : i32
    return %arg0, %c0_i32 : i32, i32
  }
}

</mosaic_0001>

<bundles_post_ra>
// kernel: tpu_custom_call.1
= control target key start
LH: loop header
LB: loop body
LE: loop exit
PB: predicated region body
PF: predicated region fallthrough
CT: control target
= control target key end

     0   :  { %10 = vsyncpa [#allocation3], 0  ;;  %s3976_s0 = inlined_call_operand.hbm [shape: bf16[256,128], index: 0, kind: input, shape index: {}]   ;;  %s3977_s1 = inlined_call_operand.hbm [shape: bf16[128,256], index: 1, kind: input, shape index: {}]   ;;  %s3978_s2 = inlined_call_operand.hbm [shape: bf16[256,256], index: 2, kind: input, shape index: {}]   ;;  %s3979_s3 = inlined_call_operand.hbm [shape: bf16[256,128], index: 3, kind: input, shape index: {}]   ;;  %s3980_s4 = inlined_call_operand.hbm [shape: f32[8,256], index: 4, kind: input, shape index: {}]   ;;  %s3981_s5 = inlined_call_operand.hbm [shape: f32[256,128], index: 5, kind: output, shape index: {}]  }
   0x1   :  { %12 = vsyncpa [#allocation3 + $0x1], 0 }
   0x2   :  { %13 = vsyncpa [#allocation6], 0 }
   0x3   :  { %14 = vsyncpa [#allocation9], 0 }
   0x4   :  { %15 = vsyncpa [#allocation4], 0 }
   0x5   :  { %17 = vsyncpa [#allocation4 + $0x1], 0  ;;  %s2815_s18 = smov 0   ;;  %s2817_s19 = smov 0  }
   0x6   :  { %s2819_s20 = smov 0   ;;  %s2821_s21 = smov 0  }
   0x7 LB: > { %s2836_s22 = sadd.s32 4294967295, %s2770_s21   ;;  %s2124_s23 = sadd.s32 4294967294, %s2770_s21   ;;  %s2770_s21 = sphi %s2821_s21, %s4013_s21   ;;  %s2766_s20 = sphi %s2819_s20, %s4012_s20   ;;  %s2762_s19 = sphi %s2817_s19, %s4011_s19   ;;  %s2758_s18 = sphi %s2815_s18, %s4010_s18  }
   0x8   : > { %p43_p0 = scmp.ne.s32.totalorder %s2762_s19, %s2758_s18  ;;  %p3982_p1 = scmp.eq.s32.totalorder %s2836_s22, 0 }
   0x9   : > { %p157_p3 = scmp.eq.s32.totalorder %s2124_s23, 1  ;;  %p2125_p5 = scmp.ge.s32.totalorder %s2770_s21, 1 }
   0xa   : > { %p2845_p4 = por %p3982_p1, %p43_p0  ;;  %p164_p7 = scmp.lt.s32.totalorder %s2770_s21, 3 }
   0xb   : > { %p2850_p6 = por %p157_p3, %p43_p0  ;;  %s2772_s27 = smov [#allocation5]  }
   0xc   : > { %s3988_s24 = scalar_select %p2845_p4, 1, 0 }
   0xd   : > { %s3989_s25 = scalar_select %p2850_p6, 1, 0 }
   0xe   : > { %p2855_p8 = pnand %p2125_p5, %p164_p7  ;;  %s176_s28 = sshll.u32 %s2772_s27, 4  ;;  %s2859_s28 = int_to_ptr.vmem [resolvable:$true] %s176_s28 }
   0xf   : > { %s2773_s30 = smov [#allocation8]   ;;  %s2554_s9 = scalar_lea.hbm %s3977_s1, 2048 }
  0x10   : > { %s3990_s26 = scalar_select %p2855_p8, 1, 0 }
  0x11   : > { %p2320_p9 = pneg %p2855_p8  ;;  %s202_s6 = sshll.u32 %s2773_s30, 4  ;;  %s2870_s6 = int_to_ptr.vmem [resolvable:$true] %s202_s6 }
  0x12   : > { %p2555_p12 = scmp.ne.s32.totalorder %s3977_s1, %s2554_s9  ;;  %p2561_p5 = scmp.lt.u32.totalorder %s2554_s9, %s3977_s1 }
  0x13   : > { %p2866_p11 = pnand %p2320_p9, %p3982_p1 }
  0x15   : > { %p2880_p13 = pneg %p2866_p11 }
  0x17   : > { %p2557_p0 = pnand %p2880_p13, %p2555_p12 }
  0x19   : > { %p2558_p3 = pneg %p2557_p0 }
  0x1b   : > { %p2563_p7 = pnand %p2561_p5, %p2558_p3 }
  0x1d   : > { %2566 = shalt.err (!%p2563_p7)
}
  0x1e   : > { %s2567_s15 = scalar_lea.vmem %s2859_s28, 2048  ;;  %p2575_p2 = scmp.lt.s32.totalorder %s2859_s28, %s2859_s28 }
  0x1f   : > { %p2568_p9 = scmp.ne.s32.totalorder %s2859_s28, %s2567_s15  ;;  %p2576_p6 = scmp.lt.s32.totalorder %s2567_s15, %s2567_s15 }
  0x21   : > { %p2570_p10 = pnand %p2568_p9, %p2880_p13  ;;  %p2577_p12 = por %p2576_p6, %p2575_p2 }
  0x23   : > { %p2571_p1 = pneg %p2570_p10 }
  0x25   : > { %p2578_p0 = pnand %p2577_p12, %p2571_p1 }
  0x27   : > { %2581 = shalt.err (!%p2578_p0)
}
  0x28   : > { %s3983_s16 = smov 128   ;;  %s2775_s17 = smov 8  }
  0x29   : > { %2323 = dma.hbm_to_vmem [thread:$0]  (!%p2866_p11), %s3977_s1, 2048, %s2859_s28, [#allocation6], %s3983_s16, %s3983_s16, %s2775_s17  }
  0x2a   : > { %s2582_s8 = scalar_lea.hbm %s3979_s3, 2048 }
  0x2b   : > { %p2583_p1 = scmp.ne.s32.totalorder %s3979_s3, %s2582_s8  ;;  %p2589_p10 = scmp.lt.u32.totalorder %s2582_s8, %s3979_s3 }
  0x2d   : > { %p2585_p2 = pnand %p2583_p1, %p2880_p13 }
  0x2f   : > { %p2586_p6 = pneg %p2585_p2 }
  0x31   : > { %p2591_p3 = pnand %p2589_p10, %p2586_p6 }
  0x33   : > { %2594 = shalt.err (!%p2591_p3)
}
  0x34   : > { %s2595_s28 = scalar_lea.vmem %s2870_s6, 2048  ;;  %p2603_p12 = scmp.lt.s32.totalorder %s2870_s6, %s2870_s6 }
  0x35   : > { %p2596_p5 = scmp.ne.s32.totalorder %s2870_s6, %s2595_s28  ;;  %p2604_p0 = scmp.lt.s32.totalorder %s2595_s28, %s2595_s28 }
  0x37   : > { %p2598_p7 = pnand %p2596_p5, %p2880_p13  ;;  %p2605_p1 = por %p2604_p0, %p2603_p12 }
  0x39   : > { %p2599_p9 = pneg %p2598_p7 }
  0x3b   : > { %p2606_p2 = pnand %p2605_p1, %p2599_p9 }
  0x3d   : > { %2609 = shalt.err (!%p2606_p2)
}
  0x3e   : > { %s2776_s14 = smov 64   ;;  %s2777_s15 = smov 4  }
  0x3f   : > { %2329 = dma.hbm_to_vmem [thread:$0]  (!%p2866_p11), %s3979_s3, 2048, %s2870_s6, [#allocation9], %s2776_s14, %s2776_s14, %s2777_s15  }
  0x40   : > { %s2778_s30 = smov [#allocation7]   ;;  %s2779_s8 = smov [#allocation10]  }
  0x41   : > { %s189_s7 = sshll.u32 %s2778_s30, 4  ;;  %s216_s9 = sshll.u32 %s2779_s8, 4  ;;  %s190_s7 = int_to_ptr.vmem [resolvable:$true] %s189_s7  ;;  %s2930_s9 = int_to_ptr.vmem [resolvable:$true] %s216_s9 }
  0x42   : > { %s2610_s13 = scalar_lea.hbm %s3978_s2, 4096 }
  0x43   : > { %p2611_p6 = scmp.ne.s32.totalorder %s3978_s2, %s2610_s13  ;;  %p2617_p5 = scmp.lt.u32.totalorder %s2610_s13, %s3978_s2 }
  0x45   : > { %p2613_p10 = pnand %p2611_p6, %p2880_p13 }
  0x47   : > { %p2614_p3 = pneg %p2613_p10 }
  0x49   : > { %p2619_p7 = pnand %p2617_p5, %p2614_p3 }
  0x4b   : > { %2622 = shalt.err (!%p2619_p7)
}
  0x4c   : > { %s2623_s27 = scalar_lea.vmem %s190_s7, 4096  ;;  %p2631_p1 = scmp.lt.s32.totalorder %s190_s7, %s190_s7 }
  0x4d   : > { %p2624_p9 = scmp.ne.s32.totalorder %s190_s7, %s2623_s27  ;;  %p2632_p2 = scmp.lt.s32.totalorder %s2623_s27, %s2623_s27 }
  0x4f   : > { %p2626_p12 = pnand %p2624_p9, %p2880_p13  ;;  %p2633_p4 = por %p2632_p2, %p2631_p1 }
  0x51   : > { %p2627_p0 = pneg %p2626_p12 }
  0x53   : > { %p2634_p8 = pnand %p2633_p4, %p2627_p0 }
  0x55   : > { %2637 = shalt.err (!%p2634_p8)
}
  0x56   : > { %s3993_s16 = smov 128   ;;  %s2638_s13 = scalar_lea.hbm %s3980_s4, 256 }
  0x57   : > { %2326 = dma.hbm_to_vmem [thread:$0]  (!%p2866_p11), %s3978_s2, 4096, %s190_s7, [#allocation6], %s3993_s16, %s3993_s16, %s2775_s17  }
  0x58   : > { %p2639_p6 = scmp.ne.s32.totalorder %s3980_s4, %s2638_s13  ;;  %p2645_p10 = scmp.lt.u32.totalorder %s2638_s13, %s3980_s4 }
  0x5a   : > { %p2641_p4 = pnand %p2639_p6, %p2880_p13 }
  0x5c   : > { %p2642_p8 = pneg %p2641_p4 }
  0x5e   : > { %p2647_p3 = pnand %p2645_p10, %p2642_p8 }
  0x60   : > { %2650 = shalt.err (!%p2647_p3)
}
  0x61   : > { %s2651_s17 = scalar_lea.vmem %s2930_s9, 256  ;;  %p2659_p12 = scmp.lt.s32.totalorder %s2930_s9, %s2930_s9 }
  0x62   : > { %p2652_p5 = scmp.ne.s32.totalorder %s2930_s9, %s2651_s17  ;;  %p2660_p0 = scmp.lt.s32.totalorder %s2651_s17, %s2651_s17 }
  0x64   : > { %p2654_p7 = pnand %p2652_p5, %p2880_p13  ;;  %p2661_p1 = por %p2660_p0, %p2659_p12 }
  0x66   : > { %p2655_p9 = pneg %p2654_p7 }
  0x68   : > { %p2662_p2 = pnand %p2661_p1, %p2655_p9 }
  0x6a   : > { %2665 = shalt.err (!%p2662_p2)
}
  0x6b   : > { %2332 = dma.hbm_to_vmem [thread:$0]  (!%p2866_p11), %s3980_s4, 256, %s2930_s9, [#allocation9]  }
  0x6c   : > { %s2977_s12 = sadd.s32 1, %s2770_s21   ;;  %s30_s30 = sadd.s32 1, %s2766_s20 }
  0x6d   : > { %s27_s29 = ssub.s32 %s2770_s21, %s2977_s12  ;;  %p37_p6 = scmp.ne.s32.totalorder %s2766_s20, %s2762_s19 }
  0x6e   : > { %p28_p13 = scmp.eq.s32.totalorder %s27_s29, 0  ;;  %p38_p4 = scmp.eq.s32.totalorder %s2770_s21, 0 }
  0x6f   : > { %p3994_p10 = scmp.eq.s32.totalorder %s2836_s22, 1  ;;  %p2345_p5 = scmp.lt.s32.totalorder %s2770_s21, 2 }
  0x70   : > { %s2986_s8 = scalar_select %p28_p13, %s2766_s20, %s30_s30  }
  0x71   : > { %p39_p8 = por %p38_p4, %p37_p6  ;;  %p2990_p3 = por %p3994_p10, %p37_p6 }
  0x72   : > { %s227_s11 = sand.u32 1, %s2766_s20   ;;  %s2218_s9 = sshll.u32 %s2770_s21, 10 }
  0x73   : > { %s2131_s13 = sshll.u32 %s227_s11, 6  ;;  %s3000_s6 = scalar_lea.hbm %s3976_s0, %s2218_s9 }
  0x74   : > { %s231_s27 = scalar_lea.vmem [#allocation2], %s2131_s13  ;;  %p3004_p11 = pnand %p2345_p5, %p39_p8 }
  0x75   : > { %s238_s17 = sshll.u32 %s231_s27, 4  ;;  %s3008_s16 = scalar_lea.sflag [#allocation3], %s227_s11  ;;  %s3002_s17 = int_to_ptr.vmem [resolvable:$true] %s238_s17 }
  0x76   : > { %s2666_s29 = scalar_lea.hbm %s3000_s6, 1024  ;;  %p2668_p9 = pneg %p3004_p11 }
  0x77   : > { %p2667_p7 = scmp.ne.s32.totalorder %s3000_s6, %s2666_s29  ;;  %s2671_s9 = scalar_lea.hbm %s3976_s0, 2048 }
  0x78   : > { %p2672_p1 = scmp.lt.u32.totalorder %s3000_s6, %s3976_s0  ;;  %p2673_p2 = scmp.lt.u32.totalorder %s2671_s9, %s2666_s29 }
  0x79   : > { %p2669_p12 = pnand %p2668_p9, %p2667_p7  ;;  %p2675_p6 = scmp.lt.u32.totalorder %s2666_s29, %s3000_s6 }
  0x7a   : > { %p2674_p13 = por %p2673_p2, %p2672_p1 }
  0x7b   : > { %p2670_p0 = pneg %p2669_p12 }
  0x7c   : > { %p2676_p4 = por %p2675_p6, %p2674_p13 }
  0x7e   : > { %p2677_p8 = pnand %p2676_p4, %p2670_p0 }
  0x80   : > { %2680 = shalt.err (!%p2677_p8)
}
  0x81   : > { %s2681_s11 = scalar_lea.vmem %s3002_s17, 1024  ;;  %s2780_s27 = smov [#allocation2]  }
  0x82   : > { %p2682_p10 = scmp.ne.s32.totalorder %s3002_s17, %s2681_s11  ;;  %s2686_s30 = sshll.u32 %s2780_s27, 4  ;;  %s2687_s30 = int_to_ptr.vmem [resolvable:$false] %s2686_s30 }
  0x83   : > { %s2688_s13 = scalar_lea.vmem %s2687_s30, 2048  ;;  %p2689_p12 = scmp.lt.s32.totalorder %s3002_s17, %s2687_s30 }
  0x84   : > { %p2684_p5 = pnand %p2682_p10, %p2668_p9  ;;  %p2690_p1 = scmp.lt.s32.totalorder %s2688_s13, %s2681_s11 }
  0x86   : > { %p2685_p7 = pneg %p2684_p5  ;;  %p2691_p2 = por %p2690_p1, %p2689_p12 }
  0x88   : > { %p2692_p13 = pnand %p2691_p2, %p2685_p7 }
  0x8a   : > { %2695 = shalt.err (!%p2692_p13)
}
  0x8b   : > { %2336 = dma.hbm_to_vmem [thread:$0]  (!%p3004_p11), %s3000_s6, 1024, %s3002_s17, %s3008_s16, %s2776_s14, %s2776_s14, %s2777_s15  }
  0x8c   : > { %p3997_p9 = scmp.ne.s32.totalorder %s3990_s26, 0 }
  0x8e   : > { %250 = sbr.rel (%p3997_p9) target bundleno = 1276 (0x4fc), region = 40 }
  0x95   : > { %s3042_s29 = sand.u32 1, %s2762_s19   ;;  %p3998_p0 = scmp.ne.s32.totalorder %s3988_s24, 0 }
  0x96   : > { %s2135_s9 = sshll.u32 %s3042_s29, 6  ;;  %s253_s28 = scalar_lea.sflag [#allocation3], %s3042_s29 }
  0x97   : > { %s3046_s23 = scalar_lea.vmem [#allocation2], %s2135_s9 }
  0x98   : > { %2741 = dma.done.wait (%p3998_p0), %s253_s28, 1024  }
  0x99   : > { %2743 = vsyncadd (%p3998_p0), %s253_s28, 4294966272  ;;  %p3999_p11 = scmp.eq.s32.totalorder %s2836_s22, 0 }
  0x9b   : > { %2745 = dma.done.wait (%p3999_p11), [#allocation6], 6144   ;;  %p4000_p6 = pmov %p3999_p11 }
  0x9d   : > { %2747 = vsyncadd (%p4000_p6), [#allocation6], 4294961152  ;;  %p4001_p4 = pmov %p4000_p6 }
  0x9f   : > { %2749 = dma.done.wait (%p4001_p4), [#allocation9], 2304   ;;  %p4002_p8 = pmov %p4001_p4 }
  0xa0   : > { %v2781_v0 = vmov 0   ;;  %v2394_v1 = vld [vmem:[#allocation5 + $0x4] ss:$8 sps:$4 sm:$0xff]   ;;  %v2396_v2 = vld [vmem:[#allocation5] ss:$8 sps:$4 sm:$0xff]   ;;  %v2420_v19 = vld [vmem:[%s3046_s23 + $0x10] sm:$0xff]   ;;  %v347_v41 = vlaneseq }
  0xa1   : > { %2751 = vsyncadd (%p4002_p8), [#allocation9], 4294964992  ;;  %517 = vmatprep.mubr.bf16.mxu0 %v2781_v0  ;;  %485 = vmatprep.subr.bf16.mxu0 %v2394_v1  ;;  %v2397_v3 = vld [vmem:[#allocation5 + $0x14] ss:$8 sps:$4 sm:$0xff]   ;;  %v2399_v4 = vld [vmem:[#allocation5 + $0x10] ss:$8 sps:$4 sm:$0xff]  }
  0xa2   : > { %486 = vmatpush1.bf16.msra.mxu0 %v2396_v2  ;;  %v2400_v5 = vld [vmem:[#allocation5 + $0x24] ss:$8 sps:$4 sm:$0xff]   ;;  %v2402_v6 = vld [vmem:[#allocation5 + $0x20] ss:$8 sps:$4 sm:$0xff]   ;;  %v2403_v7 = vld [vmem:[#allocation5 + $0x34] ss:$8 sps:$4 sm:$0xff]  }
  0xa3   : > { %487 = vmatprep.subr.bf16.mxu0 %v2397_v3  ;;  %v2405_v8 = vld [vmem:[#allocation5 + $0x30] ss:$8 sps:$4 sm:$0xff]   ;;  %v2406_v9 = vld [vmem:[#allocation5 + $0x44] ss:$8 sps:$4 sm:$0xff]   ;;  %v2408_v10 = vld [vmem:[#allocation5 + $0x40] ss:$8 sps:$4 sm:$0xff]  }
  0xa4   : > { %v2409_v11 = vld [vmem:[#allocation5 + $0x54] ss:$8 sps:$4 sm:$0xff]   ;;  %v2411_v12 = vld [vmem:[#allocation5 + $0x50] ss:$8 sps:$4 sm:$0xff]   ;;  %v2412_v13 = vld [vmem:[#allocation5 + $0x64] ss:$8 sps:$4 sm:$0xff]  }
  0xa5   : > { %v2414_v14 = vld [vmem:[#allocation5 + $0x60] ss:$8 sps:$4 sm:$0xff]   ;;  %v2415_v15 = vld [vmem:[#allocation5 + $0x74] ss:$8 sps:$4 sm:$0xff]   ;;  %v2417_v16 = vld [vmem:[#allocation5 + $0x70] ss:$8 sps:$4 sm:$0xff]  }
  0xa6   : > { %488 = vmatpush1.bf16.msra.mxu0 %v2399_v4  ;;  %v2418_v17 = vld [vmem:[%s3046_s23] sm:$0xff]   ;;  %v2419_v18 = vld [vmem:[%s3046_s23 + $0x8] sm:$0xff]   ;;  %v2421_v20 = vld [vmem:[%s3046_s23 + $0x18] sm:$0xff]   ;;  %v348_v42 = vshrl.u32 %v347_v41, 7  ;;  %s2140_s24 = sshll.u32 %s3042_s29, 7  ;;  %s2219_s14 = sshll.u32 %s2836_s22, 11 }
  0xa7   : > { %489 = vmatprep.subr.bf16.mxu0 %v2400_v5  ;;  %v2422_v21 = vld [vmem:[%s3046_s23 + $0x20] sm:$0xff]   ;;  %v2423_v22 = vld [vmem:[%s3046_s23 + $0x28] sm:$0xff]   ;;  %v2424_v23 = vld [vmem:[%s3046_s23 + $0x30] sm:$0xff]   ;;  %s3892_s26 = scalar_lea.vmem [#allocation11], %s2140_s24  ;;  %s3927_s7 = scalar_lea.hbm %s3981_s5, %s2219_s14 }
  0xa8   : > { %v2425_v24 = vld [vmem:[%s3046_s23 + $0x38] sm:$0xff]   ;;  %v2426_v25 = vld [vmem:[#allocation7 + $0x4] ss:$8 sps:$4 sm:$0xff]   ;;  %v2428_v26 = vld [vmem:[#allocation7] ss:$8 sps:$4 sm:$0xff]   ;;  %v3068_v43 = vsub.s32 0, %v348_v42 }
  0xa9   : > { %v2429_v27 = vld [vmem:[#allocation7 + $0x14] ss:$8 sps:$4 sm:$0xff]   ;;  %1223 = vmatprep.subr.bf16.mxu1 %v2426_v25  ;;  %v2431_v28 = vld [vmem:[#allocation7 + $0x10] ss:$8 sps:$4 sm:$0xff]   ;;  %v2432_v29 = vld [vmem:[#allocation7 + $0x24] ss:$8 sps:$4 sm:$0xff]  }
  0xaa   : > { %490 = vmatpush1.bf16.msra.mxu0 %v2402_v6  ;;  %1224 = vmatpush1.bf16.msra.mxu1 %v2428_v26  ;;  %v2434_v30 = vld [vmem:[#allocation7 + $0x20] ss:$8 sps:$4 sm:$0xff]   ;;  %v2435_v31 = vld [vmem:[#allocation7 + $0x34] ss:$8 sps:$4 sm:$0xff]   ;;  %v2437_v32 = vld [vmem:[#allocation7 + $0x30] ss:$8 sps:$4 sm:$0xff]  }
  0xab   : > { %491 = vmatprep.subr.bf16.mxu0 %v2403_v7  ;;  %1225 = vmatprep.subr.bf16.mxu1 %v2429_v27  ;;  %v2438_v33 = vld [vmem:[#allocation7 + $0x44] ss:$8 sps:$4 sm:$0xff]   ;;  %v2440_v34 = vld [vmem:[#allocation7 + $0x40] ss:$8 sps:$4 sm:$0xff]   ;;  %v2441_v35 = vld [vmem:[#allocation7 + $0x54] ss:$8 sps:$4 sm:$0xff]  }
  0xac   : > { %v2443_v36 = vld [vmem:[#allocation7 + $0x50] ss:$8 sps:$4 sm:$0xff]   ;;  %v2444_v37 = vld [vmem:[#allocation7 + $0x64] ss:$8 sps:$4 sm:$0xff]   ;;  %v2446_v38 = vld [vmem:[#allocation7 + $0x60] ss:$8 sps:$4 sm:$0xff]  }
  0xad   : > { %v2447_v39 = vld [vmem:[#allocation7 + $0x74] ss:$8 sps:$4 sm:$0xff]   ;;  %v2449_v40 = vld [vmem:[#allocation7 + $0x70] ss:$8 sps:$4 sm:$0xff]   ;;  %v3070_v45 = vsub.s32 1, %v348_v42  ;;  %s2013_s15 = sshll.u32 %s3892_s26, 4  ;;  %s3929_s15 = int_to_ptr.vmem [resolvable:$true] %s2013_s15 }
  0xae   : > { %492 = vmatpush1.bf16.msra.mxu0 %v2405_v8  ;;  %1226 = vmatpush1.bf16.msra.mxu1 %v2431_v28  ;;  %v302_v44 = vld [vmem:[#allocation10] ss:$8 sm:$0x3]  ;;  %v2450_v27 = vld [vmem:[#allocation7 + $0x84] ss:$8 sps:$4 sm:$0xff]   ;;  %s2000_s22 = scalar_lea.sflag [#allocation4], %s3042_s29 }
  0xaf   : > { %493 = vmatprep.subr.bf16.mxu0 %v2406_v9  ;;  %1227 = vmatprep.subr.bf16.mxu1 %v2432_v29  ;;  %4003 = vst [vmem:[#allocation16_spill] sm:$0xff] %v3070_v45  ;;  %v3073_v46 = vrot.slane %v302_v44, %v3068_v43  ;;  %v3076_v47 = vrot.slane %v302_v44, %v3070_v45  ;;  %v2452_v28 = vld [vmem:[#allocation7 + $0x80] ss:$8 sps:$4 sm:$0xff]   ;;  %s2696_s16 = scalar_lea.vmem %s3929_s15, 2048  ;;  %s2782_s11 = smov [#allocation11]  }
  0xb0   : > { %p2697_p10 = scmp.ne.s32.totalorder %s3929_s15, %s2696_s16  ;;  %s2700_s27 = sshll.u32 %s2782_s11, 4  ;;  %s2701_s27 = int_to_ptr.vmem [resolvable:$false] %s2700_s27 }
  0xb1   : > { %s2702_s30 = scalar_lea.vmem %s2701_s27, 4096  ;;  %p2703_p12 = scmp.lt.s32.totalorder %s3929_s15, %s2701_s27 }
  0xb2   : > { %494 = vmatpush1.bf16.msra.mxu0 %v2408_v10  ;;  %1228 = vmatpush1.bf16.msra.mxu1 %v2434_v30  ;;  %p2698_p5 = pnand %p2697_p10, %p2990_p3  ;;  %p2704_p1 = scmp.lt.s32.totalorder %s2702_s30, %s2696_s16 }
  0xb3   : > { %495 = vmatprep.subr.bf16.mxu0 %v2409_v11  ;;  %1229 = vmatprep.subr.bf16.mxu1 %v2435_v31 }
  0xb4   : > { %p2699_p7 = pneg %p2698_p5  ;;  %p2705_p2 = por %p2704_p1, %p2703_p12 }
  0xb6   : > { %496 = vmatpush1.bf16.msra.mxu0 %v2411_v12  ;;  %1230 = vmatpush1.bf16.msra.mxu1 %v2437_v32  ;;  %p2706_p13 = pnand %p2705_p2, %p2699_p7 }
  0xb7   : > { %497 = vmatprep.subr.bf16.mxu0 %v2412_v13  ;;  %1231 = vmatprep.subr.bf16.mxu1 %v2438_v33 }
  0xba   : > { %498 = vmatpush1.bf16.msra.mxu0 %v2414_v14  ;;  %1232 = vmatpush1.bf16.msra.mxu1 %v2440_v34 }
  0xbb   : > { %499 = vmatprep.subr.bf16.mxu0 %v2415_v15  ;;  %1233 = vmatprep.subr.bf16.mxu1 %v2441_v35 }
  0xbe   : > { %500 = vmatpush1.bf16.msra.mxu0 %v2417_v16  ;;  %1234 = vmatpush1.bf16.msra.mxu1 %v2443_v36  ;;  %v2453_v36 = vld [vmem:[#allocation7 + $0x94] ss:$8 sps:$4 sm:$0xff]  }
  0xbf   : > { %1235 = vmatprep.subr.bf16.mxu1 %v2444_v37 }
  0xc1   : > { %518 = vmatmul.mubr.bf16.vlgmr.msra.gmra.mrb[0].mxu0 %v2418_v17 }
  0xc2   : > { %527 = vmatprep.mubr.bf16.mxu0 %v2781_v0  ;;  %1236 = vmatpush1.bf16.msra.mxu1 %v2446_v38 }
  0xc3   : > { %1237 = vmatprep.subr.bf16.mxu1 %v2447_v39 }
  0xc6   : > { %1238 = vmatpush1.bf16.msra.mxu1 %v2449_v40  ;;  %v2455_v40 = vld [vmem:[#allocation7 + $0x90] ss:$8 sps:$4 sm:$0xff]  }
  0xc7   : > { %1239 = vmatprep.subr.bf16.mxu1 %v2450_v27 }
  0xc9   : > { %528 = vmatmul.mubr.bf16.gmra.mrb[4].mxu0 %v2419_v18 }
  0xca   : > { %537 = vmatprep.mubr.bf16.mxu0 %v2781_v0  ;;  %1240 = vmatpush1.bf16.msra.mxu1 %v2452_v28  ;;  %v2465_v28 = vld [vmem:[#allocation7 + $0xd4] ss:$8 sps:$4 sm:$0xff]  }
  0xcb   : > { %1241 = vmatprep.subr.bf16.mxu1 %v2453_v36 }
  0xce   : > { %1242 = vmatpush1.bf16.msra.mxu1 %v2455_v40 }
  0xd1   : > { %538 = vmatmul.mubr.bf16.gmra.mrb[8].mxu0 %v2420_v19 }
  0xd2   : > { %547 = vmatprep.mubr.bf16.mxu0 %v2781_v0 }
  0xd9   : > { %548 = vmatmul.mubr.bf16.gmra.mrb[12].mxu0 %v2421_v20 }
  0xda   : > { %557 = vmatprep.mubr.bf16.mxu0 %v2781_v0 }
  0xe1   : > { %558 = vmatmul.mubr.bf16.gmra.mrb[16].mxu0 %v2422_v21 }
  0xe2   : > { %567 = vmatprep.mubr.bf16.mxu0 %v2781_v0 }
  0xe9   : > { %568 = vmatmul.mubr.bf16.gmra.mrb[20].mxu0 %v2423_v22 }
  0xea   : > { %577 = vmatprep.mubr.bf16.mxu0 %v2781_v0 }
  0xf1   : > { %578 = vmatmul.mubr.bf16.gmra.mrb[24].mxu0 %v2424_v23 }
  0xf2   : > { %587 = vmatprep.mubr.bf16.mxu0 %v2781_v0 }
  0xf9   : > { %588 = vmatmul.mubr.bf16.gmra.mrb[28].mxu0 %v2425_v24 }
 0x194   : > { %v519_v48 = vpop.f32.mrb[0].mxu0 }
 0x195   : > { %v3079_v49 = vadd.f32 %v519_v48, %v3073_v46  ;;  %v521_v50 = vpop.f32.mrb[1].mxu0 }
 0x196   : > { %v3082_v51 = vadd.f32 %v521_v50, %v3076_v47  ;;  %v523_v52 = vpop.f32.mrb[2].mxu0 }
 0x197   : > { %v3085_v53 = vadd.f32 %v523_v52, %v3073_v46  ;;  %v525_v54 = vpop.f32.mrb[3].mxu0  ;;  %v646_v55 = vmul.f32 %v3079_v49, %v3079_v49 }
 0x198   : > { %v3090_v56 = vadd.f32 %v525_v54, %v3076_v47  ;;  %v598_v57 = vadd.f32 %v3082_v51, %v3079_v49  ;;  %v647_v58 = vmul.f32 %v3082_v51, %v3082_v51  ;;  %v2456_v54 = vld [vmem:[#allocation7 + $0xa4] ss:$8 sps:$4 sm:$0xff]  }
 0x199   : > { %v648_v60 = vmul.f32 %v3085_v53, %v3085_v53  ;;  %1243 = vmatprep.subr.bf16.mxu1 %v2456_v54  ;;  %v2470_v54 = vld [vmem:[#allocation7 + $0xe0] ss:$8 sps:$4 sm:$0xff]  }
 0x19a   : > { %599 = vadd.xlane.f32.xlu0 %v598_v57  ;;  %v678_v59 = vadd.f32 %v647_v58, %v646_v55  ;;  %v649_v61 = vmul.f32 %v3090_v56, %v3090_v56  ;;  %v601_v63 = vadd.f32 %v3090_v56, %v3085_v53 }
 0x19c   : > { %v529_v62 = vpop.f32.mrb[4].mxu0  ;;  %679 = vadd.xlane.f32.xlu1 %v678_v59  ;;  %v681_v4 = vadd.f32 %v649_v61, %v648_v60  ;;  %v2458_v59 = vld [vmem:[#allocation7 + $0xa0] ss:$8 sps:$4 sm:$0xff]  }
 0x19d   : > { %v3103_v0 = vadd.f32 %v529_v62, %v3073_v46  ;;  %v531_v1 = vpop.f32.mrb[5].mxu0  ;;  %1244 = vmatpush1.bf16.msra.mxu1 %v2458_v59 }
 0x19e   : > { %v3106_v2 = vadd.f32 %v531_v1, %v3076_v47  ;;  %v533_v3 = vpop.f32.mrb[6].mxu0  ;;  %602 = vadd.xlane.f32.xlu0 %v601_v63  ;;  %v2459_v1 = vld [vmem:[#allocation7 + $0xb4] ss:$8 sps:$4 sm:$0xff]  }
 0x19f   : > { %v3109_v5 = vadd.f32 %v533_v3, %v3073_v46  ;;  %v535_v6 = vpop.f32.mrb[7].mxu0  ;;  %v650_v9 = vmul.f32 %v3103_v0, %v3103_v0  ;;  %1245 = vmatprep.subr.bf16.mxu1 %v2459_v1 }
 0x1a0   : > { %v3112_v7 = vadd.f32 %v535_v6, %v3076_v47  ;;  %682 = vadd.xlane.f32.xlu1 %v681_v4  ;;  %v604_v8 = vadd.f32 %v3106_v2, %v3103_v0  ;;  %v651_v10 = vmul.f32 %v3106_v2, %v3106_v2 }
 0x1a1   : > { %v652_v12 = vmul.f32 %v3109_v5, %v3109_v5 }
 0x1a2   : > { %605 = vadd.xlane.f32.xlu0 %v604_v8  ;;  %v607_v11 = vadd.f32 %v3112_v7, %v3109_v5  ;;  %v653_v13 = vmul.f32 %v3112_v7, %v3112_v7  ;;  %v684_v15 = vadd.f32 %v651_v10, %v650_v9  ;;  %v2461_v8 = vld [vmem:[#allocation7 + $0xb0] ss:$8 sps:$4 sm:$0xff]  }
 0x1a3   : > { %1246 = vmatpush1.bf16.msra.mxu1 %v2461_v8 }
 0x1a4   : > { %v539_v14 = vpop.f32.mrb[8].mxu0  ;;  %608 = vadd.xlane.f32.xlu1 %v607_v11  ;;  %v687_v20 = vadd.f32 %v653_v13, %v652_v12 }
 0x1a5   : > { %v3127_v16 = vadd.f32 %v539_v14, %v3073_v46  ;;  %v541_v17 = vpop.f32.mrb[9].mxu0 }
 0x1a6   : > { %v3130_v18 = vadd.f32 %v541_v17, %v3076_v47  ;;  %v543_v19 = vpop.f32.mrb[10].mxu0  ;;  %685 = vadd.xlane.f32.xlu0 %v684_v15  ;;  %v2462_v15 = vld [vmem:[#allocation7 + $0xc4] ss:$8 sps:$4 sm:$0xff]  }
 0x1a7   : > { %v3133_v21 = vadd.f32 %v543_v19, %v3073_v46  ;;  %v545_v22 = vpop.f32.mrb[11].mxu0  ;;  %v654_v25 = vmul.f32 %v3127_v16, %v3127_v16  ;;  %1247 = vmatprep.subr.bf16.mxu1 %v2462_v15 }
 0x1a8   : > { %v3136_v23 = vadd.f32 %v545_v22, %v3076_v47  ;;  %688 = vadd.xlane.f32.xlu1 %v687_v20  ;;  %v610_v24 = vadd.f32 %v3130_v18, %v3127_v16  ;;  %v655_v26 = vmul.f32 %v3130_v18, %v3130_v18  ;;  %v2464_v22 = vld [vmem:[#allocation7 + $0xc0] ss:$8 sps:$4 sm:$0xff]  }
 0x1a9   : > { %v656_v30 = vmul.f32 %v3133_v21, %v3133_v21  ;;  %1248 = vmatpush1.bf16.msra.mxu1 %v2464_v22 }
 0x1aa   : > { %611 = vadd.xlane.f32.xlu0 %v610_v24  ;;  %v613_v29 = vadd.f32 %v3136_v23, %v3133_v21  ;;  %v657_v31 = vmul.f32 %v3136_v23, %v3136_v23  ;;  %v690_v33 = vadd.f32 %v655_v26, %v654_v25  ;;  %1249 = vmatprep.subr.bf16.mxu1 %v2465_v28 }
 0x1ac   : > { %v549_v32 = vpop.f32.mrb[12].mxu0  ;;  %614 = vadd.xlane.f32.xlu1 %v613_v29  ;;  %v693_v39 = vadd.f32 %v657_v31, %v656_v30 }
 0x1ad   : > { %v3151_v34 = vadd.f32 %v549_v32, %v3073_v46  ;;  %v551_v35 = vpop.f32.mrb[13].mxu0  ;;  %v2467_v32 = vld [vmem:[#allocation7 + $0xd0] ss:$8 sps:$4 sm:$0xff]  }
 0x1ae   : > { %v3154_v37 = vadd.f32 %v551_v35, %v3076_v47  ;;  %v553_v38 = vpop.f32.mrb[14].mxu0  ;;  %691 = vadd.xlane.f32.xlu0 %v690_v33  ;;  %1250 = vmatpush1.bf16.msra.mxu1 %v2467_v32 }
 0x1af   : > { %v3157_v41 = vadd.f32 %v553_v38, %v3073_v46  ;;  %v555_v42 = vpop.f32.mrb[15].mxu0  ;;  %v658_v44 = vmul.f32 %v3151_v34, %v3151_v34 }
 0x1b0   : > { %v3162_v48 = vadd.f32 %v555_v42, %v3076_v47  ;;  %694 = vadd.xlane.f32.xlu1 %v693_v39  ;;  %v616_v50 = vadd.f32 %v3154_v37, %v3151_v34  ;;  %v659_v52 = vmul.f32 %v3154_v37, %v3154_v37  ;;  %v2468_v42 = vld [vmem:[#allocation7 + $0xe4] ss:$8 sps:$4 sm:$0xff]  }
 0x1b1   : > { %v660_v57 = vmul.f32 %v3157_v41, %v3157_v41  ;;  %1251 = vmatprep.subr.bf16.mxu1 %v2468_v42 }
 0x1b2   : > { %617 = vadd.xlane.f32.xlu0 %v616_v50  ;;  %v619_v55 = vadd.f32 %v3162_v48, %v3157_v41  ;;  %v661_v58 = vmul.f32 %v3162_v48, %v3162_v48  ;;  %v696_v61 = vadd.f32 %v659_v52, %v658_v44  ;;  %1252 = vmatpush1.bf16.msra.mxu1 %v2470_v54 }
 0x1b4   : > { %v559_v60 = vpop.f32.mrb[16].mxu0  ;;  %620 = vadd.xlane.f32.xlu1 %v619_v55  ;;  %v699_v6 = vadd.f32 %v661_v58, %v660_v57 }
 0x1b5   : > { %v3175_v62 = vadd.f32 %v559_v60, %v3073_v46  ;;  %v561_v63 = vpop.f32.mrb[17].mxu0  ;;  %v2471_v60 = vld [vmem:[#allocation7 + $0xf4] ss:$8 sps:$4 sm:$0xff]  }
 0x1b6   : > { %v3178_v3 = vadd.f32 %v561_v63, %v3076_v47  ;;  %v563_v4 = vpop.f32.mrb[18].mxu0  ;;  %697 = vadd.xlane.f32.xlu0 %v696_v61  ;;  %1253 = vmatprep.subr.bf16.mxu1 %v2471_v60 }
 0x1b7   : > { %v3181_v9 = vadd.f32 %v563_v4, %v3073_v46  ;;  %v565_v10 = vpop.f32.mrb[19].mxu0  ;;  %v662_v11 = vmul.f32 %v3175_v62, %v3175_v62  ;;  %v2473_v4 = vld [vmem:[#allocation7 + $0xf0] ss:$8 sps:$4 sm:$0xff]  }
 0x1b8   : > { %v3186_v12 = vadd.f32 %v565_v10, %v3076_v47  ;;  %700 = vadd.xlane.f32.xlu1 %v699_v6  ;;  %v622_v13 = vadd.f32 %v3178_v3, %v3175_v62  ;;  %v663_v14 = vmul.f32 %v3178_v3, %v3178_v3  ;;  %1254 = vmatpush1.bf16.msra.mxu1 %v2473_v4 }
 0x1b9   : > { %v664_v19 = vmul.f32 %v3181_v9, %v3181_v9 }
 0x1ba   : > { %623 = vadd.xlane.f32.xlu0 %v622_v13  ;;  %v625_v17 = vadd.f32 %v3186_v12, %v3181_v9  ;;  %v665_v20 = vmul.f32 %v3186_v12, %v3186_v12  ;;  %v702_v25 = vadd.f32 %v663_v14, %v662_v11 }
 0x1bc   : > { %v569_v24 = vpop.f32.mrb[20].mxu0  ;;  %626 = vadd.xlane.f32.xlu1 %v625_v17  ;;  %v705_v31 = vadd.f32 %v665_v20, %v664_v19 }
 0x1bd   : > { %v3199_v26 = vadd.f32 %v569_v24, %v3073_v46  ;;  %v571_v27 = vpop.f32.mrb[21].mxu0 }
 0x1be   : > { %v3202_v29 = vadd.f32 %v571_v27, %v3076_v47  ;;  %v573_v30 = vpop.f32.mrb[22].mxu0  ;;  %703 = vadd.xlane.f32.xlu0 %v702_v25 }
 0x1bf   : > { %v3205_v33 = vadd.f32 %v573_v30, %v3073_v46  ;;  %v575_v35 = vpop.f32.mrb[23].mxu0  ;;  %v666_v36 = vmul.f32 %v3199_v26, %v3199_v26 }
 0x1c0   : > { %v3210_v38 = vadd.f32 %v575_v35, %v3076_v47  ;;  %706 = vadd.xlane.f32.xlu1 %v705_v31  ;;  %v628_v39 = vadd.f32 %v3202_v29, %v3199_v26  ;;  %v667_v40 = vmul.f32 %v3202_v29, %v3202_v29 }
 0x1c1   : > { %v668_v50 = vmul.f32 %v3205_v33, %v3205_v33 }
 0x1c2   : > { %629 = vadd.xlane.f32.xlu0 %v628_v39  ;;  %v631_v44 = vadd.f32 %v3210_v38, %v3205_v33  ;;  %v669_v52 = vmul.f32 %v3210_v38, %v3210_v38  ;;  %v708_v57 = vadd.f32 %v667_v40, %v666_v36 }
 0x1c4   : > { %v579_v55 = vpop.f32.mrb[24].mxu0  ;;  %632 = vadd.xlane.f32.xlu1 %v631_v44  ;;  %v711_v1 = vadd.f32 %v669_v52, %v668_v50 }
 0x1c5   : > { %v3223_v58 = vadd.f32 %v579_v55, %v3073_v46  ;;  %v581_v59 = vpop.f32.mrb[25].mxu0 }
 0x1c6   : > { %v3226_v61 = vadd.f32 %v581_v59, %v3076_v47  ;;  %v583_v63 = vpop.f32.mrb[26].mxu0  ;;  %709 = vadd.xlane.f32.xlu0 %v708_v57 }
 0x1c7   : > { %v3229_v6 = vadd.f32 %v583_v63, %v3073_v46  ;;  %v585_v8 = vpop.f32.mrb[27].mxu0  ;;  %v670_v10 = vmul.f32 %v3223_v58, %v3223_v58 }
 0x1c8   : > { %v3234_v11 = vadd.f32 %v585_v8, %v3076_v47  ;;  %712 = vadd.xlane.f32.xlu1 %v711_v1  ;;  %v634_v13 = vadd.f32 %v3226_v61, %v3223_v58  ;;  %v671_v14 = vmul.f32 %v3226_v61, %v3226_v61 }
 0x1c9   : > { %v672_v17 = vmul.f32 %v3229_v6, %v3229_v6 }
 0x1ca   : > { %635 = vadd.xlane.f32.xlu0 %v634_v13  ;;  %v637_v15 = vadd.f32 %v3234_v11, %v3229_v6  ;;  %v673_v19 = vmul.f32 %v3234_v11, %v3234_v11  ;;  %v714_v22 = vadd.f32 %v671_v14, %v670_v10 }
 0x1cc   : > { %v589_v20 = vpop.f32.mrb[28].mxu0  ;;  %638 = vadd.xlane.f32.xlu1 %v637_v15  ;;  %v717_v30 = vadd.f32 %v673_v19, %v672_v17 }
 0x1cd   : > { %v3247_v24 = vadd.f32 %v589_v20, %v3073_v46  ;;  %v591_v25 = vpop.f32.mrb[29].mxu0 }
 0x1ce   : > { %v3250_v27 = vadd.f32 %v591_v25, %v3076_v47  ;;  %v593_v28 = vpop.f32.mrb[30].mxu0  ;;  %715 = vadd.xlane.f32.xlu0 %v714_v22 }
 0x1cf   : > { %v3253_v31 = vadd.f32 %v593_v28, %v3073_v46  ;;  %v595_v32 = vpop.f32.mrb[31].mxu0  ;;  %v674_v39 = vmul.f32 %v3247_v24, %v3247_v24 }
 0x1d0   : > { %v3256_v35 = vadd.f32 %v595_v32, %v3076_v47  ;;  %718 = vadd.xlane.f32.xlu1 %v717_v30  ;;  %v640_v36 = vadd.f32 %v3250_v27, %v3247_v24  ;;  %v675_v40 = vmul.f32 %v3250_v27, %v3250_v27 }
 0x1d1   : > { %v676_v46 = vmul.f32 %v3253_v31, %v3253_v31 }
 0x1d2   : > { %641 = vadd.xlane.f32.xlu0 %v640_v36  ;;  %v643_v42 = vadd.f32 %v3256_v35, %v3253_v31  ;;  %v677_v47 = vmul.f32 %v3256_v35, %v3256_v35  ;;  %v720_v44 = vadd.f32 %v675_v40, %v674_v39 }
 0x1d4   : > { %644 = vadd.xlane.f32.xlu1 %v643_v42  ;;  %v723_v50 = vadd.f32 %v677_v47, %v676_v46  ;;  %v304_v42 = vld [vmem:[#allocation10 + $0x1] ss:$8 sm:$0x3] }
 0x1d6   : > { %721 = vadd.xlane.f32.xlu0 %v720_v44 }
 0x1d8   : > { %724 = vadd.xlane.f32.xlu1 %v723_v50 }
 0x227   : > { %v600_v52 = vpop.xlane.xlu0 %599 }
 0x228   : > { %v726_v54 = vmul.f32 0.00390625, %v600_v52 }
 0x229   : > { %v680_v55 = vpop.xlane.xlu1 %679 }
 0x22a   : > { %v742_v57 = vmul.f32 0.00390625, %v680_v55  ;;  %v758_v59 = vmul.f32 %v726_v54, %v726_v54  ;;  %v791_v52 = vsub.f32 %v3082_v51, %v726_v54  ;;  %v3294_v51 = vrot.slane %v304_v42, %v3068_v43 }
 0x22b   : > { %v603_v60 = vpop.xlane.xlu0 %602 }
 0x22c   : > { %v774_v63 = vsub.f32 %v742_v57, %v758_v59  ;;  %v3270_v1 = vmul.f32 0.00390625, %v603_v60  ;;  %v3286_v57 = vrot.slane %v304_v42, %v3070_v45 }
 0x22d   : > { %v683_v4 = vpop.xlane.xlu1 %682 }
 0x22e   : > { %v822_v8 = vadd.f32 1e-05, %v774_v63  ;;  %v743_v10 = vmul.f32 0.00390625, %v683_v4  ;;  %v759_v13 = vmul.f32 %v3270_v1, %v3270_v1  ;;  %v306_v63 = vld [vmem:[#allocation10 + $0x2] ss:$8 sm:$0x3]  ;;  %v790_v4 = vsub.f32 %v3079_v49, %v726_v54 }
 0x22f   : > { %v606_v14 = vpop.xlane.xlu0 %605  ;;  %v3301_v49 = vrot.slane %v306_v63, %v3070_v45 }
 0x230   : > { %2490 = vrsqrt.f32 %v822_v8  ;;  %v3274_v15 = vmul.f32 0.00390625, %v606_v14  ;;  %v775_v17 = vsub.f32 %v743_v10, %v759_v13 }
 0x231   : > { %v609_v19 = vpop.xlane.xlu1 %608 }
 0x232   : > { %v3276_v20 = vmul.f32 0.00390625, %v609_v19  ;;  %v823_v22 = vadd.f32 1e-05, %v775_v17  ;;  %v760_v28 = vmul.f32 %v3274_v15, %v3274_v15  ;;  %v794_v42 = vsub.f32 %v3103_v0, %v3274_v15 }
 0x233   : > { %v686_v25 = vpop.xlane.xlu0 %685 }
 0x234   : > { %v744_v30 = vmul.f32 0.00390625, %v686_v25  ;;  %2492 = vrsqrt.f32 %v823_v22  ;;  %v761_v39 = vmul.f32 %v3276_v20, %v3276_v20  ;;  %v3298_v25 = vrot.slane %v306_v63, %v3068_v43 }
 0x235   : > { %v689_v32 = vpop.xlane.xlu1 %688 }
 0x236   : > { %v776_v36 = vsub.f32 %v744_v30, %v760_v28  ;;  %v745_v40 = vmul.f32 0.00390625, %v689_v32  ;;  %v793_v28 = vsub.f32 %v3090_v56, %v3270_v1 }
 0x237   : > { %v612_v46 = vpop.xlane.xlu0 %611 }
 0x238   : > { %v824_v47 = vadd.f32 1e-05, %v776_v36  ;;  %v777_v44 = vsub.f32 %v745_v40, %v761_v39  ;;  %v3282_v50 = vmul.f32 0.00390625, %v612_v46  ;;  %v792_v40 = vsub.f32 %v3085_v53, %v3270_v1 }
 0x239   : > { %v615_v55 = vpop.xlane.xlu1 %614  ;;  %v795_v46 = vsub.f32 %v3106_v2, %v3274_v15 }
 0x23a   : > { %v2491_v59 = vpop.eup %2490  ;;  %2494 = vrsqrt.f32 %v824_v47  ;;  %v825_v60 = vadd.f32 1e-05, %v777_v44  ;;  %v3289_v8 = vmul.f32 0.00390625, %v615_v55  ;;  %v762_v14 = vmul.f32 %v3282_v50, %v3282_v50 }
 0x23b   : > { %v692_v10 = vpop.xlane.xlu0 %691  ;;  %v855_v13 = vmul.f32 %v2491_v59, %v791_v52  ;;  %v854_v54 = vmul.f32 %v2491_v59, %v790_v4  ;;  %v796_v47 = vsub.f32 %v3109_v5, %v3276_v20 }
 0x23c   : > { %2496 = vrsqrt.f32 %v825_v60  ;;  %v746_v17 = vmul.f32 0.00390625, %v692_v10  ;;  %v763_v32 = vmul.f32 %v3289_v8, %v3289_v8  ;;  %v797_v60 = vsub.f32 %v3112_v7, %v3276_v20 }
 0x23d   : > { %v695_v19 = vpop.xlane.xlu1 %694  ;;  %v898_v22 = vmul.f32 %v3286_v57, %v855_v13  ;;  %v897_v0 = vmul.f32 %v3294_v51, %v854_v54 }
 0x23e   : > { %v778_v30 = vsub.f32 %v746_v17, %v762_v14  ;;  %v747_v36 = vmul.f32 0.00390625, %v695_v19  ;;  %v2493_v39 = vpop.eup %2492  ;;  %v801_v17 = vsub.f32 %v3136_v23, %v3289_v8 }
 0x23f   : > { %v618_v44 = vpop.xlane.xlu0 %617  ;;  %v857_v59 = vmul.f32 %v2493_v39, %v793_v28  ;;  %v941_v53 = vadd.f32 %v3301_v49, %v898_v22  ;;  %v856_v1 = vmul.f32 %v2493_v39, %v792_v40 }
 0x240   : > { %v826_v56 = vadd.f32 1e-05, %v778_v30  ;;  %v779_v52 = vsub.f32 %v747_v36, %v763_v32  ;;  %v3315_v55 = vmul.f32 0.00390625, %v618_v44  ;;  %v940_v36 = vadd.f32 %v3298_v25, %v897_v0 }
 0x241   : > { %v621_v63 = vpop.xlane.xlu1 %620  ;;  %v900_v20 = vmul.f32 %v3286_v57, %v857_v59  ;;  %v899_v13 = vmul.f32 %v3294_v51, %v856_v1  ;;  %v973_v32 = vmax.f32 %v941_v53, 0.0 }
 0x242   : > { %2498 = vrsqrt.f32 %v826_v56  ;;  %v827_v15 = vadd.f32 1e-05, %v779_v52  ;;  %v3327_v10 = vmul.f32 0.00390625, %v621_v63  ;;  %v764_v19 = vmul.f32 %v3315_v55, %v3315_v55 }
 0x243   : > { %v698_v7 = vpop.xlane.xlu0 %697  ;;  %v943_v30 = vadd.f32 %v3301_v49, %v900_v20  ;;  %v942_v56 = vadd.f32 %v3298_v25, %v899_v13  ;;  %v972_v45 = vmax.f32 %v940_v36, 0.0 }
 0x244   : > { %v2495_v14 = vpop.eup %2494  ;;  %2500 = vrsqrt.f32 %v827_v15  ;;  %v748_v22 = vmul.f32 0.00390625, %v698_v7  ;;  %v765_v54 = vmul.f32 %v3327_v10, %v3327_v10 }
 0x245   : > { %v701_v28 = vpop.xlane.xlu1 %700  ;;  %v859_v23 = vmul.f32 %v2495_v14, %v795_v46  ;;  %v975_v59 = vmax.f32 %v943_v30, 0.0  ;;  %v858_v1 = vmul.f32 %v2495_v14, %v794_v42  ;;  %v974_v5 = vmax.f32 %v942_v56, 0.0 }
 0x246   : > { %v2497_v39 = vpop.eup %2496  ;;  %v780_v40 = vsub.f32 %v748_v22, %v764_v19  ;;  %v749_v44 = vmul.f32 0.00390625, %v701_v28  ;;  %v802_v46 = vsub.f32 %v3151_v34, %v3315_v55 }
 0x247   : > { %v624_v52 = vpop.xlane.xlu0 %623  ;;  %v861_v63 = vmul.f32 %v2497_v39, %v797_v60  ;;  %v860_v15 = vmul.f32 %v2497_v39, %v796_v47  ;;  %v1005_v53 = vpack.c.bf16 %v975_v59, %v973_v32  ;;  %v902_v0 = vmul.f32 %v3286_v57, %v859_v23 }
 0x248   : > { %v828_v7 = vadd.f32 1e-05, %v780_v40  ;;  %v781_v4 = vsub.f32 %v749_v44, %v765_v54  ;;  %v3340_v2 = vmul.f32 0.00390625, %v624_v52  ;;  %v901_v42 = vmul.f32 %v3294_v51, %v858_v1 }
 0x249   : > { %v627_v20 = vpop.xlane.xlu1 %626  ;;  %v904_v19 = vmul.f32 %v3286_v57, %v861_v63  ;;  %1255 = vmatprep.mubr.bf16.mxu1 %v1005_v53  ;;  %v1004_v60 = vpack.c.bf16 %v974_v5, %v972_v45  ;;  %v945_v54 = vadd.f32 %v3301_v49, %v902_v0  ;;  %v903_v36 = vmul.f32 %v3294_v51, %v860_v15 }
 0x24a   : > { %2502 = vrsqrt.f32 %v828_v7  ;;  %v829_v13 = vadd.f32 1e-05, %v781_v4  ;;  %v3347_v47 = vmul.f32 0.00390625, %v627_v20  ;;  %v766_v14 = vmul.f32 %v3340_v2, %v3340_v2 }
 0x24b   : > { %v704_v22 = vpop.xlane.xlu0 %703  ;;  %v947_v32 = vadd.f32 %v3301_v49, %v904_v19  ;;  %v803_v4 = vsub.f32 %v3154_v37, %v3315_v55  ;;  %v804_v39 = vsub.f32 %v3157_v41, %v3327_v10  ;;  %1256 = vmatmul.mubr.bf16.vlgmr.msra.gmra.mrb[0].mxu1 %v1004_v60  ;;  %v977_v40 = vmax.f32 %v945_v54, 0.0 }
 0x24c   : > { %v2499_v28 = vpop.eup %2498  ;;  %2504 = vrsqrt.f32 %v829_v13  ;;  %v750_v30 = vmul.f32 0.00390625, %v704_v22  ;;  %v767_v45 = vmul.f32 %v3347_v47, %v3347_v47  ;;  %v944_v59 = vadd.f32 %v3298_v25, %v901_v42 }
 0x24d   : > { %v707_v5 = vpop.xlane.xlu1 %706  ;;  %v979_v52 = vmax.f32 %v947_v32, 0.0  ;;  %v805_v63 = vsub.f32 %v3162_v48, %v3327_v10  ;;  %v946_v37 = vadd.f32 %v3298_v25, %v903_v36  ;;  %v4004_v15 = vsub.f32 %v3130_v18, %v3282_v50 }
 0x24e   : > { %v2501_v44 = vpop.eup %2500  ;;  %v782_v56 = vsub.f32 %v750_v30, %v766_v14  ;;  %v751_v23 = vmul.f32 0.00390625, %v707_v5  ;;  %v976_v14 = vmax.f32 %v944_v59, 0.0  ;;  %v806_v54 = vsub.f32 %v3175_v62, %v3340_v2 }
 0x24f   : > { %v630_v1 = vpop.xlane.xlu0 %629  ;;  %v863_v7 = vmul.f32 %v2499_v28, %v4004_v15  ;;  %v865_v20 = vmul.f32 %v2501_v44, %v801_v17  ;;  %v1007_v13 = vpack.c.bf16 %v979_v52, %v977_v40  ;;  %v978_v22 = vmax.f32 %v946_v37, 0.0 }
 0x250   : > { %v830_v53 = vadd.f32 1e-05, %v782_v56  ;;  %v783_v0 = vsub.f32 %v751_v23, %v767_v45  ;;  %v3367_v19 = vmul.f32 0.00390625, %v630_v1  ;;  %v4005_v18 = vsub.f32 %v3127_v16, %v3282_v50 }
 0x251   : > { %v633_v60 = vpop.xlane.xlu1 %632  ;;  %v906_v42 = vmul.f32 %v3286_v57, %v863_v7  ;;  %v908_v48 = vmul.f32 %v3286_v57, %v865_v20  ;;  %1265 = vmatprep.mubr.bf16.mxu1 %v1007_v13  ;;  %v1006_v36 = vpack.c.bf16 %v978_v22, %v976_v14  ;;  %v4006_v59 = vsub.f32 %v3133_v21, %v3289_v8 }
 0x252   : > { %2506 = vrsqrt.f32 %v830_v53  ;;  %v831_v30 = vadd.f32 1e-05, %v783_v0  ;;  %v862_v17 = vmul.f32 %v2499_v28, %v4005_v18  ;;  %v3376_v32 = vmul.f32 0.00390625, %v633_v60 }
 0x253   : > { %v768_v45 = vmul.f32 %v3367_v19, %v3367_v19  ;;  %v710_v5 = vpop.xlane.xlu0 %709  ;;  %v949_v40 = vadd.f32 %v3301_v49, %v906_v42  ;;  %v951_v52 = vadd.f32 %v3301_v49, %v908_v48  ;;  %v864_v1 = vmul.f32 %v2501_v44, %v4006_v59  ;;  %1266 = vmatmul.mubr.bf16.gmra.mrb[4].mxu1 %v1006_v36 }
 0x254   : > { %v2503_v56 = vpop.eup %2502  ;;  %2508 = vrsqrt.f32 %v831_v30  ;;  %v752_v23 = vmul.f32 0.00390625, %v710_v5  ;;  %v807_v16 = vsub.f32 %v3178_v3, %v3340_v2  ;;  %v808_v50 = vsub.f32 %v3181_v9, %v3347_v47 }
 0x255   : > { %v769_v28 = vmul.f32 %v3376_v32, %v3376_v32  ;;  %v713_v37 = vpop.xlane.xlu1 %712  ;;  %v981_v15 = vmax.f32 %v949_v40, 0.0  ;;  %v983_v0 = vmax.f32 %v951_v52, 0.0  ;;  %v905_v13 = vmul.f32 %v3294_v51, %v862_v17 }
 0x256   : > { %v2505_v7 = vpop.eup %2504  ;;  %v784_v20 = vsub.f32 %v752_v23, %v768_v45  ;;  %v753_v53 = vmul.f32 0.00390625, %v713_v37  ;;  %v809_v21 = vsub.f32 %v3186_v12, %v3347_v47  ;;  %v907_v3 = vmul.f32 %v3294_v51, %v864_v1 }
 0x257   : > { %v636_v8 = vpop.xlane.xlu0 %635  ;;  %v867_v44 = vmul.f32 %v2503_v56, %v803_v4  ;;  %v869_v60 = vmul.f32 %v2505_v7, %v805_v63  ;;  %v1009_v48 = vpack.c.bf16 %v983_v0, %v981_v15  ;;  %v948_v18 = vadd.f32 %v3298_v25, %v905_v13 }
 0x258   : > { %v832_v14 = vadd.f32 1e-05, %v784_v20  ;;  %v785_v22 = vsub.f32 %v753_v53, %v769_v28  ;;  %v3395_v42 = vmul.f32 0.00390625, %v636_v8  ;;  %v950_v36 = vadd.f32 %v3298_v25, %v907_v3 }
 0x259   : > { %v639_v30 = vpop.xlane.xlu1 %638  ;;  %v910_v17 = vmul.f32 %v3286_v57, %v867_v44  ;;  %v912_v45 = vmul.f32 %v3286_v57, %v869_v60  ;;  %v810_v12 = vsub.f32 %v3199_v26, %v3367_v19  ;;  %1275 = vmatprep.mubr.bf16.mxu1 %v1009_v48  ;;  %v866_v63 = vmul.f32 %v2503_v56, %v802_v46 }
 0x25a   : > { %2510 = vrsqrt.f32 %v832_v14  ;;  %v833_v4 = vadd.f32 1e-05, %v785_v22  ;;  %v3406_v5 = vmul.f32 0.00390625, %v639_v30  ;;  %v980_v40 = vmax.f32 %v948_v18, 0.0 }
 0x25b   : > { %v982_v23 = vmax.f32 %v950_v36, 0.0  ;;  %v770_v52 = vmul.f32 %v3395_v42, %v3395_v42  ;;  %v716_v59 = vpop.xlane.xlu0 %715  ;;  %v953_v37 = vadd.f32 %v3301_v49, %v910_v17  ;;  %v955_v15 = vadd.f32 %v3301_v49, %v912_v45 }
 0x25c   : > { %v2507_v1 = vpop.eup %2506  ;;  %2512 = vrsqrt.f32 %v833_v4  ;;  %v754_v28 = vmul.f32 0.00390625, %v716_v59  ;;  %v811_v20 = vsub.f32 %v3202_v29, %v3367_v19  ;;  %v812_v34 = vsub.f32 %v3205_v33, %v3376_v32 }
 0x25d   : > { %v1008_v55 = vpack.c.bf16 %v982_v23, %v980_v40  ;;  %v771_v46 = vmul.f32 %v3406_v5, %v3406_v5  ;;  %v719_v56 = vpop.xlane.xlu1 %718  ;;  %v985_v8 = vmax.f32 %v953_v37, 0.0  ;;  %v987_v3 = vmax.f32 %v955_v15, 0.0 }
 0x25e   : > { %v2509_v53 = vpop.eup %2508  ;;  %v786_v0 = vsub.f32 %v754_v28, %v770_v52  ;;  %v755_v13 = vmul.f32 0.00390625, %v719_v56  ;;  %v868_v60 = vmul.f32 %v2505_v7, %v804_v39  ;;  %v909_v29 = vmul.f32 %v3294_v51, %v866_v63 }
 0x25f   : > { %1276 = vmatmul.mubr.bf16.gmra.mrb[8].mxu1 %v1008_v55  ;;  %v642_v44 = vpop.xlane.xlu0 %641  ;;  %v871_v14 = vmul.f32 %v2507_v1, %v807_v16  ;;  %v873_v22 = vmul.f32 %v2509_v53, %v809_v21  ;;  %v1011_v36 = vpack.c.bf16 %v987_v3, %v985_v8  ;;  %v813_v41 = vsub.f32 %v3210_v38, %v3376_v32 }
 0x260   : > { %v834_v48 = vadd.f32 1e-05, %v786_v0  ;;  %v787_v30 = vsub.f32 %v755_v13, %v771_v46  ;;  %v3422_v18 = vmul.f32 0.00390625, %v642_v44  ;;  %v911_v45 = vmul.f32 %v3294_v51, %v868_v60 }
 0x261   : > { %v645_v17 = vpop.xlane.xlu1 %644  ;;  %v952_v4 = vadd.f32 %v3298_v25, %v909_v29  ;;  %v914_v40 = vmul.f32 %v3286_v57, %v871_v14  ;;  %v916_v23 = vmul.f32 %v3286_v57, %v873_v22  ;;  %v814_v10 = vsub.f32 %v3223_v58, %v3395_v42  ;;  %1285 = vmatprep.mubr.bf16.mxu1 %v1011_v36 }
 0x262   : > { %2514 = vrsqrt.f32 %v834_v48  ;;  %v835_v39 = vadd.f32 1e-05, %v787_v30  ;;  %v815_v16 = vsub.f32 %v3226_v61, %v3395_v42  ;;  %v3434_v7 = vmul.f32 0.00390625, %v645_v17 }
 0x263   : > { %v954_v21 = vadd.f32 %v3298_v25, %v911_v45  ;;  %v772_v63 = vmul.f32 %v3422_v18, %v3422_v18  ;;  %v722_v52 = vpop.xlane.xlu0 %721  ;;  %v957_v28 = vadd.f32 %v3301_v49, %v914_v40  ;;  %v959_v58 = vadd.f32 %v3301_v49, %v916_v23 }
 0x264   : > { %v2511_v59 = vpop.eup %2510  ;;  %2516 = vrsqrt.f32 %v835_v39  ;;  %v756_v38 = vmul.f32 0.00390625, %v722_v52  ;;  %v816_v37 = vsub.f32 %v3229_v6, %v3406_v5  ;;  %v984_v15 = vmax.f32 %v952_v4, 0.0 }
 0x265   : > { %v986_v61 = vmax.f32 %v954_v21, 0.0  ;;  %v773_v42 = vmul.f32 %v3434_v7, %v3434_v7  ;;  %v725_v55 = vpop.xlane.xlu1 %724  ;;  %v989_v13 = vmax.f32 %v957_v28, 0.0  ;;  %v991_v8 = vmax.f32 %v959_v58, 0.0 }
 0x266   : > { %v2513_v46 = vpop.eup %2512  ;;  %v788_v56 = vsub.f32 %v756_v38, %v772_v63  ;;  %v757_v0 = vmul.f32 0.00390625, %v725_v55  ;;  %v870_v44 = vmul.f32 %v2507_v1, %v806_v54  ;;  %v872_v6 = vmul.f32 %v2509_v53, %v808_v50 }
 0x267   : > { %v1010_v3 = vpack.c.bf16 %v986_v61, %v984_v15  ;;  %v875_v60 = vmul.f32 %v2511_v59, %v811_v20  ;;  %v1013_v22 = vpack.c.bf16 %v991_v8, %v989_v13  ;;  %v877_v48 = vmul.f32 %v2513_v46, %v813_v41 }
 0x268   : > { %v836_v29 = vadd.f32 1e-05, %v788_v56  ;;  %v789_v14 = vsub.f32 %v757_v0, %v773_v42  ;;  %v913_v30 = vmul.f32 %v3294_v51, %v870_v44  ;;  %v915_v36 = vmul.f32 %v3294_v51, %v872_v6 }
 0x269   : > { %1286 = vmatmul.mubr.bf16.gmra.mrb[12].mxu1 %v1010_v3  ;;  %v918_v17 = vmul.f32 %v3286_v57, %v875_v60  ;;  %v874_v62 = vmul.f32 %v2511_v59, %v810_v12  ;;  %v920_v9 = vmul.f32 %v3286_v57, %v877_v48  ;;  %v876_v47 = vmul.f32 %v2513_v46, %v812_v34 }
 0x26a   : > { %2518 = vrsqrt.f32 %v836_v29  ;;  %v837_v2 = vadd.f32 1e-05, %v789_v14  ;;  %1295 = vmatprep.mubr.bf16.mxu1 %v1013_v22  ;;  %v956_v54 = vadd.f32 %v3298_v25, %v913_v30  ;;  %v958_v50 = vadd.f32 %v3298_v25, %v915_v36 }
 0x26b   : > { %v961_v1 = vadd.f32 %v3301_v49, %v918_v17  ;;  %v917_v20 = vmul.f32 %v3294_v51, %v874_v62  ;;  %v817_v26 = vsub.f32 %v3234_v11, %v3406_v5  ;;  %v963_v19 = vadd.f32 %v3301_v49, %v920_v9 }
 0x26c   : > { %v2515_v53 = vpop.eup %2514  ;;  %2520 = vrsqrt.f32 %v837_v2  ;;  %v919_v12 = vmul.f32 %v3294_v51, %v876_v47  ;;  %v988_v45 = vmax.f32 %v956_v54, 0.0  ;;  %v990_v33 = vmax.f32 %v958_v50, 0.0 }
 0x26d   : > { %v993_v32 = vmax.f32 %v961_v1, 0.0  ;;  %v960_v34 = vadd.f32 %v3298_v25, %v917_v20  ;;  %v995_v40 = vmax.f32 %v963_v19, 0.0  ;;  %v879_v41 = vmul.f32 %v2515_v53, %v815_v16  ;;  %v2474_v1 = vld [vmem:[#allocation8 + $0x40] sm:$0xff]  }
 0x26e   : > { %v2517_v4 = vpop.eup %2516  ;;  %v962_v23 = vadd.f32 %v3298_v25, %v919_v12  ;;  %v878_v39 = vmul.f32 %v2515_v53, %v814_v10  ;;  %v1012_v21 = vpack.c.bf16 %v990_v33, %v988_v45  ;;  %v819_v10 = vsub.f32 %v3250_v27, %v3422_v18  ;;  %v2475_v20 = vld [vmem:[#allocation8] sm:$0xff]   ;;  %v2476_v53 = vld [vmem:[#allocation8 + $0x48] sm:$0xff]   ;;  %2220 = vmatprep.subr.bf16.mxu0 %v2474_v1 }
 0x26f   : > { %v881_v63 = vmul.f32 %v2517_v4, %v817_v26  ;;  %v880_v52 = vmul.f32 %v2517_v4, %v816_v37  ;;  %v1015_v11 = vpack.c.bf16 %v995_v40, %v993_v32  ;;  %v922_v59 = vmul.f32 %v3286_v57, %v879_v41  ;;  %2284 = vmatprep.subr.bf16.mxu1 %v2474_v1  ;;  %v4007_v26 = vld [vmem:[#allocation16_spill] sm:$0xff] }
 0x270   : > { %v994_v5 = vmax.f32 %v962_v23, 0.0  ;;  %v992_v58 = vmax.f32 %v960_v34, 0.0  ;;  %v921_v61 = vmul.f32 %v3294_v51, %v878_v39  ;;  %v818_v42 = vsub.f32 %v3247_v24, %v3422_v18  ;;  %2221 = vmatpush3.bf16.msra.mxu0 %v2475_v20  ;;  %2292 = vmatpush3.bf16.msra.mxu1 %v2475_v20 }
 0x271   : > { %1296 = vmatmul.mubr.bf16.gmra.mrb[16].mxu1 %v1012_v21  ;;  %v924_v38 = vmul.f32 %v3286_v57, %v881_v63  ;;  %v923_v28 = vmul.f32 %v3294_v51, %v880_v52  ;;  %v965_v15 = vadd.f32 %v3301_v49, %v922_v59  ;;  %v821_v55 = vsub.f32 %v3256_v35, %v3434_v7 }
 0x272   : > { %1305 = vmatprep.mubr.bf16.mxu1 %v1015_v11  ;;  %v1014_v46 = vpack.c.bf16 %v994_v5, %v992_v58  ;;  %v820_v44 = vsub.f32 %v3253_v31, %v3434_v7  ;;  %v964_v27 = vadd.f32 %v3298_v25, %v921_v61  ;;  %2222 = vmatprep.subr.bf16.mxu0 %v2476_v53 }
 0x273   : > { %v967_v16 = vadd.f32 %v3301_v49, %v924_v38  ;;  %v997_v56 = vmax.f32 %v965_v15, 0.0  ;;  %v966_v13 = vadd.f32 %v3298_v25, %v923_v28  ;;  %2285 = vmatprep.subr.bf16.mxu1 %v2476_v53 }
 0x274   : > { %v2519_v37 = vpop.eup %2518  ;;  %v996_v30 = vmax.f32 %v964_v27, 0.0 }
 0x275   : > { %v999_v0 = vmax.f32 %v967_v16, 0.0  ;;  %v883_v8 = vmul.f32 %v2519_v37, %v819_v10  ;;  %v882_v24 = vmul.f32 %v2519_v37, %v818_v42  ;;  %v998_v35 = vmax.f32 %v966_v13, 0.0 }
 0x276   : > { %v2521_v3 = vpop.eup %2520 }
 0x277   : > { %v1017_v6 = vpack.c.bf16 %v999_v0, %v997_v56  ;;  %v885_v60 = vmul.f32 %v2521_v3, %v821_v55  ;;  %v926_v29 = vmul.f32 %v3286_v57, %v883_v8  ;;  %v884_v18 = vmul.f32 %v2521_v3, %v820_v44 }
 0x278   : > { %v925_v7 = vmul.f32 %v3294_v51, %v882_v24  ;;  %v1016_v36 = vpack.c.bf16 %v998_v35, %v996_v30  ;;  %v2478_v30 = vld [vmem:[#allocation8 + $0x50] sm:$0xff]  }
 0x279   : > { %1306 = vmatmul.mubr.bf16.gmra.mrb[20].mxu1 %v1014_v46  ;;  %v928_v14 = vmul.f32 %v3286_v57, %v885_v60  ;;  %v969_v22 = vadd.f32 %v3301_v49, %v926_v29  ;;  %v927_v48 = vmul.f32 %v3294_v51, %v884_v18  ;;  %v2477_v51 = vld [vmem:[#allocation8 + $0x8] sm:$0xff]  }
 0x27a   : > { %1315 = vmatprep.mubr.bf16.mxu1 %v1017_v6  ;;  %v968_v47 = vadd.f32 %v3298_v25, %v925_v7  ;;  %2223 = vmatpush3.bf16.msra.mxu0 %v2477_v51 }
 0x27b   : > { %v971_v31 = vadd.f32 %v3301_v49, %v928_v14  ;;  %v1001_v17 = vmax.f32 %v969_v22, 0.0  ;;  %v970_v2 = vadd.f32 %v3298_v25, %v927_v48  ;;  %2293 = vmatpush3.bf16.msra.mxu1 %v2477_v51  ;;  %v308_v49 = vld [vmem:[#allocation10 + $0x3] ss:$8 sm:$0x3]  ;;  %2224 = vmatprep.subr.bf16.mxu0 %v2478_v30 }
 0x27c   : > { %v1000_v54 = vmax.f32 %v968_v47, 0.0  ;;  %v3496_v25 = vrot.slane %v308_v49, %v3068_v43  ;;  %v3499_v19 = vrot.slane %v308_v49, %v4007_v26  ;;  %2286 = vmatprep.subr.bf16.mxu1 %v2478_v30 }
 0x27d   : > { %v1003_v62 = vmax.f32 %v971_v31, 0.0  ;;  %v1002_v57 = vmax.f32 %v970_v2, 0.0 }
 0x27f   : > { %v1019_v9 = vpack.c.bf16 %v1003_v62, %v1001_v17  ;;  %v1018_v50 = vpack.c.bf16 %v1002_v57, %v1000_v54  ;;  %v2479_v17 = vld [vmem:[#allocation8 + $0x10] sm:$0xff]  }
 0x280   : > { %2225 = vmatpush3.bf16.msra.mxu0 %v2479_v17  ;;  %2294 = vmatpush3.bf16.msra.mxu1 %v2479_v17 }
 0x281   : > { %1316 = vmatmul.mubr.bf16.gmra.mrb[24].mxu1 %v1016_v36 }
 0x282   : > { %1325 = vmatprep.mubr.bf16.mxu1 %v1019_v9 }
 0x289   : > { %1326 = vmatmul.mubr.bf16.gmra.mrb[28].mxu1 %v1018_v50 }
 0x31e   : > { %v1257_v12 = vpop.f32.mrb[0].mxu1 }
 0x31f   : > { %v3502_v45 = vadd.f32 %v1257_v12, %v3496_v25  ;;  %v1259_v33 = vpop.f32.mrb[1].mxu1 }
 0x320   : > { %v3505_v32 = vadd.f32 %v1259_v33, %v3499_v19  ;;  %v1261_v34 = vpop.f32.mrb[2].mxu1 }
 0x321   : > { %v3508_v4 = vadd.f32 %v1261_v34, %v3496_v25  ;;  %v1263_v40 = vpop.f32.mrb[3].mxu1  ;;  %v1384_v39 = vmul.f32 %v3502_v45, %v3502_v45 }
 0x322   : > { %v3511_v23 = vadd.f32 %v1263_v40, %v3499_v19  ;;  %v1336_v41 = vadd.f32 %v3505_v32, %v3502_v45  ;;  %v1385_v21 = vmul.f32 %v3505_v32, %v3505_v32 }
 0x323   : > { %v1386_v52 = vmul.f32 %v3508_v4, %v3508_v4 }
 0x324   : > { %1337 = vadd.xlane.f32.xlu0 %v1336_v41  ;;  %v1339_v63 = vadd.f32 %v3511_v23, %v3508_v4  ;;  %v1387_v11 = vmul.f32 %v3511_v23, %v3511_v23  ;;  %v1416_v59 = vadd.f32 %v1385_v21, %v1384_v39 }
 0x326   : > { %1340 = vadd.xlane.f32.xlu1 %v1339_v63  ;;  %v1267_v5 = vpop.f32.mrb[4].mxu1  ;;  %v1419_v61 = vadd.f32 %v1387_v11, %v1386_v52 }
 0x327   : > { %v3526_v38 = vadd.f32 %v1267_v5, %v3496_v25  ;;  %v1269_v28 = vpop.f32.mrb[5].mxu1 }
 0x328   : > { %v3529_v58 = vadd.f32 %v1269_v28, %v3499_v19  ;;  %1417 = vadd.xlane.f32.xlu0 %v1416_v59  ;;  %v1271_v15 = vpop.f32.mrb[6].mxu1 }
 0x329   : > { %v3532_v10 = vadd.f32 %v1271_v15, %v3496_v25  ;;  %v1273_v16 = vpop.f32.mrb[7].mxu1  ;;  %v1388_v55 = vmul.f32 %v3526_v38, %v3526_v38  ;;  %v2480_v15 = vld [vmem:[#allocation8 + $0x58] sm:$0xff]  }
 0x32a   : > { %v3535_v37 = vadd.f32 %v1273_v16, %v3499_v19  ;;  %1420 = vadd.xlane.f32.xlu1 %v1419_v61  ;;  %v1342_v42 = vadd.f32 %v3529_v58, %v3526_v38  ;;  %v1389_v46 = vmul.f32 %v3529_v58, %v3529_v58  ;;  %2226 = vmatprep.subr.bf16.mxu0 %v2480_v15 }
 0x32b   : > { %v1390_v0 = vmul.f32 %v3532_v10, %v3532_v10  ;;  %2287 = vmatprep.subr.bf16.mxu1 %v2480_v15 }
 0x32c   : > { %1343 = vadd.xlane.f32.xlu0 %v1342_v42  ;;  %v1345_v56 = vadd.f32 %v3535_v37, %v3532_v10  ;;  %v1391_v13 = vmul.f32 %v3535_v37, %v3535_v37  ;;  %v1422_v8 = vadd.f32 %v1389_v46, %v1388_v55  ;;  %v2481_v46 = vld [vmem:[#allocation8 + $0x18] sm:$0xff]  }
 0x32d   : > { %2227 = vmatpush3.bf16.msra.mxu0 %v2481_v46  ;;  %2295 = vmatpush3.bf16.msra.mxu1 %v2481_v46  ;;  %v2489_v46 = vld [vmem:[#allocation8 + $0x38] sm:$0xff]  }
 0x32e   : > { %1346 = vadd.xlane.f32.xlu1 %v1345_v56  ;;  %v1425_v44 = vadd.f32 %v1391_v13, %v1390_v0 }
 0x330   : > { %1423 = vadd.xlane.f32.xlu0 %v1422_v8  ;;  %v2482_v8 = vld [vmem:[#allocation8 + $0x60] sm:$0xff]  }
 0x331   : > { %2228 = vmatprep.subr.bf16.mxu0 %v2482_v8  ;;  %2288 = vmatprep.subr.bf16.mxu1 %v2482_v8 }
 0x332   : > { %v1277_v3 = vpop.f32.mrb[8].mxu1  ;;  %1426 = vadd.xlane.f32.xlu1 %v1425_v44 }
 0x333   : > { %v3550_v27 = vadd.f32 %v1277_v3, %v3496_v25  ;;  %v1279_v6 = vpop.f32.mrb[9].mxu1  ;;  %v2483_v3 = vld [vmem:[#allocation8 + $0x20] sm:$0xff]  }
 0x334   : > { %v3553_v60 = vadd.f32 %v1279_v6, %v3499_v19  ;;  %v1281_v29 = vpop.f32.mrb[10].mxu1  ;;  %2229 = vmatpush3.bf16.msra.mxu0 %v2483_v3  ;;  %2296 = vmatpush3.bf16.msra.mxu1 %v2483_v3 }
 0x335   : > { %v3556_v24 = vadd.f32 %v1281_v29, %v3496_v25  ;;  %v1283_v18 = vpop.f32.mrb[11].mxu1  ;;  %v1392_v22 = vmul.f32 %v3550_v27, %v3550_v27 }
 0x336   : > { %v3559_v35 = vadd.f32 %v1283_v18, %v3499_v19  ;;  %v1348_v14 = vadd.f32 %v3553_v60, %v3550_v27  ;;  %v1393_v48 = vmul.f32 %v3553_v60, %v3553_v60 }
 0x337   : > { %v1394_v7 = vmul.f32 %v3556_v24, %v3556_v24 }
 0x338   : > { %1349 = vadd.xlane.f32.xlu0 %v1348_v14  ;;  %v1351_v31 = vadd.f32 %v3559_v35, %v3556_v24  ;;  %v1395_v36 = vmul.f32 %v3559_v35, %v3559_v35  ;;  %v1428_v62 = vadd.f32 %v1393_v48, %v1392_v22 }
 0x33a   : > { %1352 = vadd.xlane.f32.xlu1 %v1351_v31  ;;  %v1431_v9 = vadd.f32 %v1395_v36, %v1394_v7  ;;  %v2484_v7 = vld [vmem:[#allocation8 + $0x68] sm:$0xff]  }
 0x33b   : > { %2230 = vmatprep.subr.bf16.mxu0 %v2484_v7  ;;  %2289 = vmatprep.subr.bf16.mxu1 %v2484_v7 }
 0x33c   : > { %v1287_v2 = vpop.f32.mrb[12].mxu1  ;;  %1429 = vadd.xlane.f32.xlu0 %v1428_v62 }
 0x33d   : > { %v3574_v47 = vadd.f32 %v1287_v2, %v3496_v25  ;;  %v1289_v57 = vpop.f32.mrb[13].mxu1 }
 0x33e   : > { %v3577_v54 = vadd.f32 %v1289_v57, %v3499_v19  ;;  %v1291_v50 = vpop.f32.mrb[14].mxu1  ;;  %1432 = vadd.xlane.f32.xlu1 %v1431_v9  ;;  %v2485_v9 = vld [vmem:[#allocation8 + $0x28] sm:$0xff]  }
 0x33f   : > { %v3580_v1 = vadd.f32 %v1291_v50, %v3496_v25  ;;  %v1293_v20 = vpop.f32.mrb[15].mxu1  ;;  %v1396_v49 = vmul.f32 %v3574_v47, %v3574_v47  ;;  %2231 = vmatpush3.bf16.msra.mxu0 %v2485_v9  ;;  %2297 = vmatpush3.bf16.msra.mxu1 %v2485_v9 }
 0x340   : > { %v3583_v53 = vadd.f32 %v1293_v20, %v3499_v19  ;;  %v1354_v51 = vadd.f32 %v3577_v54, %v3574_v47  ;;  %v1397_v12 = vmul.f32 %v3577_v54, %v3577_v54 }
 0x341   : > { %v1398_v34 = vmul.f32 %v3580_v1, %v3580_v1 }
 0x342   : > { %1355 = vadd.xlane.f32.xlu0 %v1354_v51  ;;  %v1357_v33 = vadd.f32 %v3583_v53, %v3580_v1  ;;  %v1399_v40 = vmul.f32 %v3583_v53, %v3583_v53  ;;  %v1434_v39 = vadd.f32 %v1397_v12, %v1396_v49  ;;  %v2486_v51 = vld [vmem:[#allocation8 + $0x70] sm:$0xff]  }
 0x343   : > { %2232 = vmatprep.subr.bf16.mxu0 %v2486_v51  ;;  %2290 = vmatprep.subr.bf16.mxu1 %v2486_v51 }
 0x344   : > { %1358 = vadd.xlane.f32.xlu1 %v1357_v33  ;;  %v1297_v41 = vpop.f32.mrb[16].mxu1  ;;  %v1437_v5 = vadd.f32 %v1399_v40, %v1398_v34  ;;  %v2487_v33 = vld [vmem:[#allocation8 + $0x30] sm:$0xff]  }
 0x345   : > { %v3598_v21 = vadd.f32 %v1297_v41, %v3496_v25  ;;  %v1299_v63 = vpop.f32.mrb[17].mxu1  ;;  %2233 = vmatpush3.bf16.msra.mxu0 %v2487_v33  ;;  %2298 = vmatpush3.bf16.msra.mxu1 %v2487_v33 }
 0x346   : > { %v3601_v52 = vadd.f32 %v1299_v63, %v3499_v19  ;;  %1435 = vadd.xlane.f32.xlu0 %v1434_v39  ;;  %v1301_v11 = vpop.f32.mrb[18].mxu1 }
 0x347   : > { %v3604_v59 = vadd.f32 %v1301_v11, %v3496_v25  ;;  %v1303_v28 = vpop.f32.mrb[19].mxu1  ;;  %v1400_v42 = vmul.f32 %v3598_v21, %v3598_v21 }
 0x348   : > { %v3607_v61 = vadd.f32 %v1303_v28, %v3499_v19  ;;  %1438 = vadd.xlane.f32.xlu1 %v1437_v5  ;;  %v1360_v16 = vadd.f32 %v3601_v52, %v3598_v21  ;;  %v1401_v55 = vmul.f32 %v3601_v52, %v3601_v52  ;;  %v2488_v28 = vld [vmem:[#allocation8 + $0x78] sm:$0xff]  }
 0x349   : > { %v1402_v0 = vmul.f32 %v3604_v59, %v3604_v59  ;;  %2234 = vmatprep.subr.bf16.mxu0 %v2488_v28  ;;  %2291 = vmatprep.subr.bf16.mxu1 %v2488_v28 }
 0x34a   : > { %1361 = vadd.xlane.f32.xlu0 %v1360_v16  ;;  %v1363_v56 = vadd.f32 %v3607_v61, %v3604_v59  ;;  %v1403_v13 = vmul.f32 %v3607_v61, %v3607_v61  ;;  %v1440_v6 = vadd.f32 %v1401_v55, %v1400_v42  ;;  %2235 = vmatpush3.bf16.msra.mxu0 %v2489_v46 }
 0x34b   : > { %2299 = vmatpush3.bf16.msra.mxu1 %v2489_v46 }
 0x34c   : > { %1364 = vadd.xlane.f32.xlu1 %v1363_v56  ;;  %v1307_v44 = vpop.f32.mrb[20].mxu1  ;;  %v1443_v48 = vadd.f32 %v1403_v13, %v1402_v0 }
 0x34d   : > { %v3622_v29 = vadd.f32 %v1307_v44, %v3496_v25  ;;  %v1309_v18 = vpop.f32.mrb[21].mxu1 }
 0x34e   : > { %v3625_v14 = vadd.f32 %v1309_v18, %v3499_v19  ;;  %1441 = vadd.xlane.f32.xlu0 %v1440_v6  ;;  %v1311_v22 = vpop.f32.mrb[22].mxu1 }
 0x34f   : > { %v3628_v30 = vadd.f32 %v1311_v22, %v3496_v25  ;;  %v1313_v31 = vpop.f32.mrb[23].mxu1  ;;  %v1404_v62 = vmul.f32 %v3622_v29, %v3622_v29 }
 0x350   : > { %v3631_v36 = vadd.f32 %v1313_v31, %v3499_v19  ;;  %1444 = vadd.xlane.f32.xlu1 %v1443_v48  ;;  %v1366_v17 = vadd.f32 %v3625_v14, %v3622_v29  ;;  %v1405_v2 = vmul.f32 %v3625_v14, %v3625_v14 }
 0x351   : > { %v1406_v50 = vmul.f32 %v3628_v30, %v3628_v30 }
 0x352   : > { %1367 = vadd.xlane.f32.xlu0 %v1366_v17  ;;  %v1369_v57 = vadd.f32 %v3631_v36, %v3628_v30  ;;  %v1407_v20 = vmul.f32 %v3631_v36, %v3631_v36  ;;  %v1446_v12 = vadd.f32 %v1405_v2, %v1404_v62 }
 0x354   : > { %1370 = vadd.xlane.f32.xlu1 %v1369_v57  ;;  %v1317_v49 = vpop.f32.mrb[24].mxu1  ;;  %v1449_v63 = vadd.f32 %v1407_v20, %v1406_v50 }
 0x355   : > { %v3646_v34 = vadd.f32 %v1317_v49, %v3496_v25  ;;  %v1319_v40 = vpop.f32.mrb[25].mxu1 }
 0x356   : > { %v3649_v41 = vadd.f32 %v1319_v40, %v3499_v19  ;;  %1447 = vadd.xlane.f32.xlu0 %v1446_v12  ;;  %v1321_v39 = vpop.f32.mrb[26].mxu1 }
 0x357   : > { %v3652_v11 = vadd.f32 %v1321_v39, %v3496_v25  ;;  %v1323_v5 = vpop.f32.mrb[27].mxu1  ;;  %v1408_v42 = vmul.f32 %v3646_v34, %v3646_v34 }
 0x358   : > { %v3655_v15 = vadd.f32 %v1323_v5, %v3499_v19  ;;  %1450 = vadd.xlane.f32.xlu1 %v1449_v63  ;;  %v1372_v16 = vadd.f32 %v3649_v41, %v3646_v34  ;;  %v1409_v55 = vmul.f32 %v3649_v41, %v3649_v41 }
 0x359   : > { %v1410_v0 = vmul.f32 %v3652_v11, %v3652_v11 }
 0x35a   : > { %1373 = vadd.xlane.f32.xlu0 %v1372_v16  ;;  %v1375_v56 = vadd.f32 %v3655_v15, %v3652_v11  ;;  %v1411_v13 = vmul.f32 %v3655_v15, %v3655_v15  ;;  %v1452_v3 = vadd.f32 %v1409_v55, %v1408_v42 }
 0x35c   : > { %1376 = vadd.xlane.f32.xlu1 %v1375_v56  ;;  %v1327_v8 = vpop.f32.mrb[28].mxu1  ;;  %v1455_v48 = vadd.f32 %v1411_v13, %v1410_v0 }
 0x35d   : > { %v3670_v44 = vadd.f32 %v1327_v8, %v3496_v25  ;;  %v1329_v6 = vpop.f32.mrb[29].mxu1 }
 0x35e   : > { %v3673_v18 = vadd.f32 %v1329_v6, %v3499_v19  ;;  %1453 = vadd.xlane.f32.xlu0 %v1452_v3  ;;  %v1331_v22 = vpop.f32.mrb[30].mxu1 }
 0x35f   : > { %v3676_v31 = vadd.f32 %v1331_v22, %v3496_v25  ;;  %v1333_v7 = vpop.f32.mrb[31].mxu1  ;;  %v1412_v2 = vmul.f32 %v3670_v44, %v3670_v44 }
 0x360   : > { %v3679_v17 = vadd.f32 %v1333_v7, %v3499_v19  ;;  %1456 = vadd.xlane.f32.xlu1 %v1455_v48  ;;  %v1378_v62 = vadd.f32 %v3673_v18, %v3670_v44  ;;  %v1413_v9 = vmul.f32 %v3673_v18, %v3673_v18 }
 0x361   : > { %v1414_v25 = vmul.f32 %v3676_v31, %v3676_v31 }
 0x362   : > { %1379 = vadd.xlane.f32.xlu0 %v1378_v62  ;;  %v1381_v57 = vadd.f32 %v3679_v17, %v3676_v31  ;;  %v1415_v19 = vmul.f32 %v3679_v17, %v3679_v17  ;;  %v1458_v50 = vadd.f32 %v1413_v9, %v1412_v2 }
 0x364   : > { %1382 = vadd.xlane.f32.xlu1 %v1381_v57  ;;  %v1461_v20 = vadd.f32 %v1415_v19, %v1414_v25  ;;  %v310_v19 = vld [vmem:[#allocation10 + $0x4] ss:$8 sm:$0x3] }
 0x366   : > { %1459 = vadd.xlane.f32.xlu0 %v1458_v50 }
 0x368   : > { %1462 = vadd.xlane.f32.xlu1 %v1461_v20  ;;  %v312_v20 = vld [vmem:[#allocation10 + $0x5] ss:$8 sm:$0x3] }
 0x3b1   : > { %v1338_v51 = vpop.xlane.xlu0 %1337 }
 0x3b2   : > { %v1464_v49 = vmul.f32 0.00390625, %v1338_v51 }
 0x3b3   : > { %v1341_v12 = vpop.xlane.xlu1 %1340 }
 0x3b4   : > { %v1465_v33 = vmul.f32 0.00390625, %v1341_v12  ;;  %v1496_v39 = vmul.f32 %v1464_v49, %v1464_v49 }
 0x3b5   : > { %v1418_v40 = vpop.xlane.xlu0 %1417 }
 0x3b6   : > { %v1480_v63 = vmul.f32 0.00390625, %v1418_v40  ;;  %v1497_v16 = vmul.f32 %v1465_v33, %v1465_v33  ;;  %v1528_v40 = vsub.f32 %v3502_v45, %v1464_v49  ;;  %v1530_v45 = vsub.f32 %v3508_v4, %v1465_v33 }
 0x3b7   : > { %v1421_v5 = vpop.xlane.xlu1 %1420 }
 0x3b8   : > { %v1512_v28 = vsub.f32 %v1480_v63, %v1496_v39  ;;  %v1481_v42 = vmul.f32 0.00390625, %v1421_v5  ;;  %v1529_v39 = vsub.f32 %v3505_v32, %v1464_v49  ;;  %v3706_v5 = vrot.slane %v310_v19, %v3068_v43 }
 0x3b9   : > { %v1344_v55 = vpop.xlane.xlu0 %1343  ;;  %v1531_v32 = vsub.f32 %v3511_v23, %v1465_v33 }
 0x3ba   : > { %v1560_v46 = vadd.f32 1e-05, %v1512_v28  ;;  %v1513_v56 = vsub.f32 %v1481_v42, %v1497_v16  ;;  %v3693_v0 = vmul.f32 0.00390625, %v1344_v55  ;;  %v3709_v28 = vrot.slane %v310_v19, %v4007_v26 }
 0x3bb   : > { %v1347_v13 = vpop.xlane.xlu1 %1346  ;;  %v3714_v55 = vrot.slane %v312_v20, %v3068_v43 }
 0x3bc   : > { %2522 = vrsqrt.f32 %v1560_v46  ;;  %v1561_v8 = vadd.f32 1e-05, %v1513_v56  ;;  %v3695_v3 = vmul.f32 0.00390625, %v1347_v13  ;;  %v1498_v22 = vmul.f32 %v3693_v0, %v3693_v0 }
 0x3bd   : > { %v1424_v6 = vpop.xlane.xlu0 %1423  ;;  %v3717_v46 = vrot.slane %v312_v20, %v4007_v26  ;;  %v1532_v19 = vsub.f32 %v3526_v38, %v3693_v0 }
 0x3be   : > { %2524 = vrsqrt.f32 %v1561_v8  ;;  %v1482_v48 = vmul.f32 0.00390625, %v1424_v6  ;;  %v1499_v2 = vmul.f32 %v3695_v3, %v3695_v3 }
 0x3bf   : > { %v1427_v7 = vpop.xlane.xlu1 %1426 }
 0x3c0   : > { %v1514_v62 = vsub.f32 %v1482_v48, %v1498_v22  ;;  %v1483_v9 = vmul.f32 0.00390625, %v1427_v7 }
 0x3c2   : > { %v1562_v57 = vadd.f32 1e-05, %v1514_v62  ;;  %v1515_v25 = vsub.f32 %v1483_v9, %v1499_v2 }
 0x3c4   : > { %2526 = vrsqrt.f32 %v1562_v57  ;;  %v1563_v51 = vadd.f32 1e-05, %v1515_v25 }
 0x3c5   : > { %v1350_v50 = vpop.xlane.xlu0 %1349 }
 0x3c6   : > { %v3701_v12 = vmul.f32 0.00390625, %v1350_v50  ;;  %v2523_v16 = vpop.eup %2522  ;;  %2528 = vrsqrt.f32 %v1563_v51  ;;  %v1533_v50 = vsub.f32 %v3529_v58, %v3693_v0 }
 0x3c7   : > { %v1353_v63 = vpop.xlane.xlu1 %1352  ;;  %v1592_v49 = vmul.f32 %v2523_v16, %v1528_v40  ;;  %v1593_v13 = vmul.f32 %v2523_v16, %v1529_v39  ;;  %v1535_v40 = vsub.f32 %v3535_v37, %v3695_v3 }
 0x3c8   : > { %v3711_v42 = vmul.f32 0.00390625, %v1353_v63  ;;  %v2525_v8 = vpop.eup %2524  ;;  %v1500_v6 = vmul.f32 %v3701_v12, %v3701_v12 }
 0x3c9   : > { %v1430_v56 = vpop.xlane.xlu0 %1429  ;;  %v1594_v48 = vmul.f32 %v2525_v8, %v1530_v45  ;;  %v1595_v62 = vmul.f32 %v2525_v8, %v1531_v32  ;;  %v1636_v43 = vmul.f32 %v3709_v28, %v1593_v13  ;;  %v1635_v26 = vmul.f32 %v3706_v5, %v1592_v49 }
 0x3ca   : > { %v1484_v22 = vmul.f32 0.00390625, %v1430_v56  ;;  %v1501_v4 = vmul.f32 %v3711_v42, %v3711_v42 }
 0x3cb   : > { %v1433_v7 = vpop.xlane.xlu1 %1432  ;;  %v1638_v33 = vmul.f32 %v3709_v28, %v1595_v62  ;;  %v1679_v9 = vadd.f32 %v3717_v46, %v1636_v43  ;;  %v1637_v57 = vmul.f32 %v3706_v5, %v1594_v48  ;;  %v1678_v25 = vadd.f32 %v3714_v55, %v1635_v26 }
 0x3cc   : > { %v1516_v2 = vsub.f32 %v1484_v22, %v1500_v6  ;;  %v1485_v23 = vmul.f32 0.00390625, %v1433_v7  ;;  %v1534_v48 = vsub.f32 %v3532_v10, %v3695_v3 }
 0x3cd   : > { %v1681_v63 = vadd.f32 %v3717_v46, %v1638_v33  ;;  %v1711_v16 = vmax.f32 %v1679_v9, 0.0  ;;  %v1680_v45 = vadd.f32 %v3714_v55, %v1637_v57  ;;  %v1710_v38 = vmax.f32 %v1678_v25, 0.0 }
 0x3ce   : > { %v1564_v20 = vadd.f32 1e-05, %v1516_v2  ;;  %v1517_v51 = vsub.f32 %v1485_v23, %v1501_v4  ;;  %v2527_v32 = vpop.eup %2526 }
 0x3cf   : > { %v1356_v39 = vpop.xlane.xlu0 %1355  ;;  %v1713_v8 = vmax.f32 %v1681_v63, 0.0  ;;  %v1712_v58 = vmax.f32 %v1680_v45, 0.0  ;;  %v1597_v0 = vmul.f32 %v2527_v32, %v1533_v50  ;;  %v1596_v6 = vmul.f32 %v2527_v32, %v1532_v19 }
 0x3d0   : > { %2530 = vrsqrt.f32 %v1564_v20  ;;  %v1565_v49 = vadd.f32 1e-05, %v1517_v51  ;;  %v3739_v56 = vmul.f32 0.00390625, %v1356_v39  ;;  %v2529_v22 = vpop.eup %2528  ;;  %v1536_v63 = vsub.f32 %v3550_v27, %v3701_v12 }
 0x3d1   : > { %v1359_v13 = vpop.xlane.xlu1 %1358  ;;  %v1743_v62 = vpack.c.bf16 %v1713_v8, %v1711_v16  ;;  %v1742_v43 = vpack.c.bf16 %v1712_v58, %v1710_v38  ;;  %v1599_v26 = vmul.f32 %v2529_v22, %v1535_v40  ;;  %v1640_v33 = vmul.f32 %v3709_v28, %v1597_v0 }
 0x3d2   : > { %2532 = vrsqrt.f32 %v1565_v49  ;;  %v3741_v37 = vmul.f32 0.00390625, %v1359_v13  ;;  %v1502_v2 = vmul.f32 %v3739_v56, %v3739_v56  ;;  %v1598_v57 = vmul.f32 %v2529_v22, %v1534_v48 }
 0x3d3   : > { %v1436_v7 = vpop.xlane.xlu0 %1435  ;;  %1918 = vmatprep.mubr.bf16.mxu0 %v1743_v62  ;;  %v1642_v9 = vmul.f32 %v3709_v28, %v1599_v26  ;;  %v1639_v25 = vmul.f32 %v3706_v5, %v1596_v6  ;;  %v1683_v20 = vadd.f32 %v3717_v46, %v1640_v33  ;;  %v1537_v49 = vsub.f32 %v3553_v60, %v3701_v12 }
 0x3d4   : > { %v1486_v4 = vmul.f32 0.00390625, %v1436_v7  ;;  %v1503_v10 = vmul.f32 %v3741_v37, %v3741_v37  ;;  %1919 = vmatmul.mubr.bf16.vlgmr.msra.gmra.mrb[32].mxu0 %v1742_v43  ;;  %v1641_v40 = vmul.f32 %v3706_v5, %v1598_v57  ;;  %v1539_v6 = vsub.f32 %v3559_v35, %v3711_v42 }
 0x3d5   : > { %v1439_v23 = vpop.xlane.xlu1 %1438  ;;  %v1685_v51 = vadd.f32 %v3717_v46, %v1642_v9  ;;  %v1682_v39 = vadd.f32 %v3714_v55, %v1639_v25  ;;  %v1715_v13 = vmax.f32 %v1683_v20, 0.0 }
 0x3d6   : > { %v1518_v19 = vsub.f32 %v1486_v4, %v1502_v2  ;;  %v1487_v3 = vmul.f32 0.00390625, %v1439_v23  ;;  %v1684_v58 = vadd.f32 %v3714_v55, %v1641_v40  ;;  %v1538_v23 = vsub.f32 %v3556_v24, %v3711_v42 }
 0x3d7   : > { %v1362_v50 = vpop.xlane.xlu0 %1361  ;;  %v1717_v8 = vmax.f32 %v1685_v51, 0.0  ;;  %v1714_v48 = vmax.f32 %v1682_v39, 0.0  ;;  %v1540_v42 = vsub.f32 %v3574_v47, %v3739_v56 }
 0x3d8   : > { %v1566_v16 = vadd.f32 1e-05, %v1518_v19  ;;  %v1519_v45 = vsub.f32 %v1487_v3, %v1503_v10  ;;  %v3758_v32 = vmul.f32 0.00390625, %v1362_v50  ;;  %v1716_v60 = vmax.f32 %v1684_v58, 0.0 }
 0x3d9   : > { %v1365_v38 = vpop.xlane.xlu1 %1364  ;;  %v1745_v43 = vpack.c.bf16 %v1717_v8, %v1715_v13  ;;  %v1542_v13 = vsub.f32 %v3580_v1, %v3741_v37  ;;  %v1543_v58 = vsub.f32 %v3583_v53, %v3741_v37 }
 0x3da   : > { %v2531_v0 = vpop.eup %2530  ;;  %2534 = vrsqrt.f32 %v1566_v16  ;;  %v1567_v22 = vadd.f32 1e-05, %v1519_v45  ;;  %v3765_v27 = vmul.f32 0.00390625, %v1365_v38  ;;  %v1504_v7 = vmul.f32 %v3758_v32, %v3758_v32 }
 0x3db   : > { %v1442_v62 = vpop.xlane.xlu0 %1441  ;;  %v1601_v2 = vmul.f32 %v2531_v0, %v1537_v49  ;;  %v1600_v4 = vmul.f32 %v2531_v0, %v1536_v63  ;;  %1926 = vmatprep.mubr.bf16.mxu0 %v1745_v43  ;;  %v1744_v9 = vpack.c.bf16 %v1716_v60, %v1714_v48  ;;  %v1541_v38 = vsub.f32 %v3577_v54, %v3739_v56 }
 0x3dc   : > { %v2533_v12 = vpop.eup %2532  ;;  %2536 = vrsqrt.f32 %v1567_v22  ;;  %v1488_v26 = vmul.f32 0.00390625, %v1442_v62  ;;  %v1505_v35 = vmul.f32 %v3765_v27, %v3765_v27  ;;  %v1544_v47 = vsub.f32 %v3598_v21, %v3758_v32 }
 0x3dd   : > { %v1445_v33 = vpop.xlane.xlu1 %1444  ;;  %v1603_v19 = vmul.f32 %v2533_v12, %v1539_v6  ;;  %v1644_v10 = vmul.f32 %v3709_v28, %v1601_v2  ;;  %1927 = vmatmul.mubr.bf16.gmra.mrb[36].mxu0 %v1744_v9  ;;  %v1602_v50 = vmul.f32 %v2533_v12, %v1538_v23  ;;  %v1643_v20 = vmul.f32 %v3706_v5, %v1600_v4 }
 0x3de   : > { %v1520_v57 = vsub.f32 %v1488_v26, %v1504_v7  ;;  %v1489_v25 = vmul.f32 0.00390625, %v1445_v33 }
 0x3df   : > { %v1368_v3 = vpop.xlane.xlu0 %1367  ;;  %v1646_v24 = vmul.f32 %v3709_v28, %v1603_v19  ;;  %v1687_v16 = vadd.f32 %v3717_v46, %v1644_v10  ;;  %v1645_v45 = vmul.f32 %v3706_v5, %v1602_v50  ;;  %v1686_v49 = vadd.f32 %v3714_v55, %v1643_v20 }
 0x3e0   : > { %v1568_v51 = vadd.f32 1e-05, %v1520_v57  ;;  %v1521_v40 = vsub.f32 %v1489_v25, %v1505_v35  ;;  %v3775_v39 = vmul.f32 0.00390625, %v1368_v3 }
 0x3e1   : > { %v1371_v63 = vpop.xlane.xlu1 %1370  ;;  %v1689_v22 = vadd.f32 %v3717_v46, %v1646_v24  ;;  %v1688_v1 = vadd.f32 %v3714_v55, %v1645_v45  ;;  %v1719_v37 = vmax.f32 %v1687_v16, 0.0  ;;  %v1718_v43 = vmax.f32 %v1686_v49, 0.0 }
 0x3e2   : > { %2538 = vrsqrt.f32 %v1568_v51  ;;  %v1569_v8 = vadd.f32 1e-05, %v1521_v40  ;;  %v3791_v0 = vmul.f32 0.00390625, %v1371_v63  ;;  %v1506_v54 = vmul.f32 %v3775_v39, %v3775_v39 }
 0x3e3   : > { %v1448_v6 = vpop.xlane.xlu0 %1447  ;;  %v1721_v62 = vmax.f32 %v1689_v22, 0.0  ;;  %v1720_v2 = vmax.f32 %v1688_v1, 0.0  ;;  %v1545_v63 = vsub.f32 %v3601_v52, %v3758_v32  ;;  %v1547_v22 = vsub.f32 %v3607_v61, %v3765_v27 }
 0x3e4   : > { %v2535_v48 = vpop.eup %2534  ;;  %2540 = vrsqrt.f32 %v1569_v8  ;;  %v1490_v56 = vmul.f32 0.00390625, %v1448_v6  ;;  %v1507_v7 = vmul.f32 %v3791_v0, %v3791_v0 }
 0x3e5   : > { %v1451_v53 = vpop.xlane.xlu1 %1450  ;;  %v1605_v4 = vmul.f32 %v2535_v48, %v1541_v38  ;;  %v1747_v35 = vpack.c.bf16 %v1721_v62, %v1719_v37  ;;  %v1604_v9 = vmul.f32 %v2535_v48, %v1540_v42  ;;  %v1746_v3 = vpack.c.bf16 %v1720_v2, %v1718_v43 }
 0x3e6   : > { %v2537_v60 = vpop.eup %2536  ;;  %v1522_v12 = vsub.f32 %v1490_v56, %v1506_v54  ;;  %v1491_v26 = vmul.f32 0.00390625, %v1451_v53  ;;  %v1546_v42 = vsub.f32 %v3604_v59, %v3765_v27  ;;  %v1548_v48 = vsub.f32 %v3622_v29, %v3775_v39 }
 0x3e7   : > { %v1374_v23 = vpop.xlane.xlu0 %1373  ;;  %v1607_v33 = vmul.f32 %v2537_v60, %v1543_v58  ;;  %v1606_v57 = vmul.f32 %v2537_v60, %v1542_v13  ;;  %1934 = vmatprep.mubr.bf16.mxu0 %v1747_v35  ;;  %v1648_v20 = vmul.f32 %v3709_v28, %v1605_v4  ;;  %v1647_v40 = vmul.f32 %v3706_v5, %v1604_v9 }
 0x3e8   : > { %v1570_v25 = vadd.f32 1e-05, %v1522_v12  ;;  %v1523_v19 = vsub.f32 %v1491_v26, %v1507_v7  ;;  %v3799_v10 = vmul.f32 0.00390625, %v1374_v23  ;;  %1935 = vmatmul.mubr.bf16.gmra.mrb[40].mxu0 %v1746_v3  ;;  %v1550_v3 = vsub.f32 %v3628_v30, %v3791_v0 }
 0x3e9   : > { %v1377_v50 = vpop.xlane.xlu1 %1376  ;;  %v1650_v51 = vmul.f32 %v3709_v28, %v1607_v33  ;;  %v1649_v24 = vmul.f32 %v3706_v5, %v1606_v57  ;;  %v1691_v13 = vadd.f32 %v3717_v46, %v1648_v20  ;;  %v1690_v52 = vadd.f32 %v3714_v55, %v1647_v40 }
 0x3ea   : > { %2542 = vrsqrt.f32 %v1570_v25  ;;  %v1571_v16 = vadd.f32 1e-05, %v1523_v19  ;;  %v3809_v45 = vmul.f32 0.00390625, %v1377_v50  ;;  %v1508_v49 = vmul.f32 %v3799_v10, %v3799_v10 }
 0x3eb   : > { %v1454_v38 = vpop.xlane.xlu0 %1453  ;;  %v1693_v8 = vadd.f32 %v3717_v46, %v1650_v51  ;;  %v1692_v59 = vadd.f32 %v3714_v55, %v1649_v24  ;;  %v1723_v1 = vmax.f32 %v1691_v13, 0.0  ;;  %v1722_v43 = vmax.f32 %v1690_v52, 0.0 }
 0x3ec   : > { %v2539_v58 = vpop.eup %2538  ;;  %2544 = vrsqrt.f32 %v1571_v16  ;;  %v1492_v6 = vmul.f32 0.00390625, %v1454_v38  ;;  %v1509_v54 = vmul.f32 %v3809_v45, %v3809_v45  ;;  %v1549_v19 = vsub.f32 %v3625_v14, %v3775_v39 }
 0x3ed   : > { %v1457_v56 = vpop.xlane.xlu1 %1456  ;;  %v1725_v62 = vmax.f32 %v1693_v8, 0.0  ;;  %v1724_v12 = vmax.f32 %v1692_v59, 0.0  ;;  %v1609_v26 = vmul.f32 %v2539_v58, %v1545_v63  ;;  %v1608_v61 = vmul.f32 %v2539_v58, %v1544_v47 }
 0x3ee   : > { %v2541_v7 = vpop.eup %2540  ;;  %v1524_v53 = vsub.f32 %v1492_v6, %v1508_v49  ;;  %v1493_v37 = vmul.f32 0.00390625, %v1457_v56  ;;  %v1551_v24 = vsub.f32 %v3631_v36, %v3791_v0  ;;  %v1552_v63 = vsub.f32 %v3646_v34, %v3799_v10 }
 0x3ef   : > { %v1380_v60 = vpop.xlane.xlu0 %1379  ;;  %v1611_v2 = vmul.f32 %v2541_v7, %v1547_v22  ;;  %v1749_v23 = vpack.c.bf16 %v1725_v62, %v1723_v1  ;;  %v1748_v33 = vpack.c.bf16 %v1724_v12, %v1722_v43  ;;  %v1652_v9 = vmul.f32 %v3709_v28, %v1609_v26 }
 0x3f0   : > { %v1572_v27 = vadd.f32 1e-05, %v1524_v53  ;;  %v1525_v29 = vsub.f32 %v1493_v37, %v1509_v54  ;;  %v3826_v4 = vmul.f32 0.00390625, %v1380_v60  ;;  %v1610_v25 = vmul.f32 %v2541_v7, %v1546_v42 }
 0x3f1   : > { %v1383_v35 = vpop.xlane.xlu1 %1382  ;;  %v1654_v57 = vmul.f32 %v3709_v28, %v1611_v2  ;;  %1942 = vmatprep.mubr.bf16.mxu0 %v1749_v23  ;;  %v1695_v20 = vadd.f32 %v3717_v46, %v1652_v9  ;;  %v1651_v39 = vmul.f32 %v3706_v5, %v1608_v61  ;;  %v1553_v62 = vsub.f32 %v3649_v41, %v3799_v10 }
 0x3f2   : > { %2546 = vrsqrt.f32 %v1572_v27  ;;  %v1573_v21 = vadd.f32 1e-05, %v1525_v29  ;;  %v3834_v32 = vmul.f32 0.00390625, %v1383_v35  ;;  %1943 = vmatmul.mubr.bf16.gmra.mrb[44].mxu0 %v1748_v33  ;;  %v1510_v47 = vmul.f32 %v3826_v4, %v3826_v4 }
 0x3f3   : > { %v1460_v50 = vpop.xlane.xlu0 %1459  ;;  %v1697_v51 = vadd.f32 %v3717_v46, %v1654_v57  ;;  %v1653_v30 = vmul.f32 %v3706_v5, %v1610_v25  ;;  %v1727_v49 = vmax.f32 %v1695_v20, 0.0  ;;  %v1694_v6 = vadd.f32 %v3714_v55, %v1651_v39 }
 0x3f4   : > { %v2543_v40 = vpop.eup %2542  ;;  %2548 = vrsqrt.f32 %v1573_v21  ;;  %v1494_v14 = vmul.f32 0.00390625, %v1460_v50  ;;  %v1511_v42 = vmul.f32 %v3834_v32, %v3834_v32  ;;  %v1554_v27 = vsub.f32 %v3652_v11, %v3809_v45 }
 0x3f5   : > { %v1463_v16 = vpop.xlane.xlu1 %1462  ;;  %v1729_v58 = vmax.f32 %v1697_v51, 0.0  ;;  %v1696_v52 = vadd.f32 %v3714_v55, %v1653_v30  ;;  %v1613_v59 = vmul.f32 %v2543_v40, %v1549_v19  ;;  %v1612_v54 = vmul.f32 %v2543_v40, %v1548_v48 }
 0x3f6   : > { %v2545_v38 = vpop.eup %2544  ;;  %v1526_v13 = vsub.f32 %v1494_v14, %v1510_v47  ;;  %v1495_v8 = vmul.f32 0.00390625, %v1463_v16  ;;  %v1726_v34 = vmax.f32 %v1694_v6, 0.0  ;;  %v1555_v29 = vsub.f32 %v3655_v15, %v3809_v45 }
 0x3f7   : > { %v1615_v22 = vmul.f32 %v2545_v38, %v1551_v24  ;;  %v1751_v56 = vpack.c.bf16 %v1729_v58, %v1727_v49  ;;  %v1728_v1 = vmax.f32 %v1696_v52, 0.0  ;;  %v1656_v7 = vmul.f32 %v3709_v28, %v1613_v59 }
 0x3f8   : > { %v1574_v36 = vadd.f32 1e-05, %v1526_v13  ;;  %v1527_v0 = vsub.f32 %v1495_v8, %v1511_v42  ;;  %v1614_v37 = vmul.f32 %v2545_v38, %v1550_v3  ;;  %v1655_v60 = vmul.f32 %v3706_v5, %v1612_v54 }
 0x3f9   : > { %v1658_v53 = vmul.f32 %v3709_v28, %v1615_v22  ;;  %1950 = vmatprep.mubr.bf16.mxu0 %v1751_v56  ;;  %v1750_v12 = vpack.c.bf16 %v1728_v1, %v1726_v34  ;;  %v1699_v48 = vadd.f32 %v3717_v46, %v1656_v7  ;;  %v1556_v14 = vsub.f32 %v3670_v44, %v3826_v4 }
 0x3fa   : > { %2550 = vrsqrt.f32 %v1574_v36  ;;  %v1575_v43 = vadd.f32 1e-05, %v1527_v0  ;;  %v1657_v2 = vmul.f32 %v3706_v5, %v1614_v37  ;;  %v1698_v41 = vadd.f32 %v3714_v55, %v1655_v60 }
 0x3fb   : > { %v1701_v26 = vadd.f32 %v3717_v46, %v1658_v53  ;;  %1951 = vmatmul.mubr.bf16.gmra.mrb[48].mxu0 %v1750_v12  ;;  %v1731_v23 = vmax.f32 %v1699_v48, 0.0  ;;  %v1557_v39 = vsub.f32 %v3673_v18, %v3826_v4  ;;  %v1559_v42 = vsub.f32 %v3679_v17, %v3834_v32 }
 0x3fc   : > { %v2547_v61 = vpop.eup %2546  ;;  %2552 = vrsqrt.f32 %v1575_v43  ;;  %v1700_v33 = vadd.f32 %v3714_v55, %v1657_v2  ;;  %v1730_v57 = vmax.f32 %v1698_v41, 0.0  ;;  %v1558_v44 = vsub.f32 %v3676_v31, %v3834_v32  ;;  %v3889_v43 = vld [vmem:[#allocation10 + $0x6] ss:$0 sm:$0xff] }
 0x3fd   : > { %v1616_v10 = vmul.f32 %v2547_v61, %v1552_v63  ;;  %v1733_v35 = vmax.f32 %v1701_v26, 0.0  ;;  %v1617_v25 = vmul.f32 %v2547_v61, %v1553_v62 }
 0x3fe   : > { %v2549_v9 = vpop.eup %2548  ;;  %v1732_v21 = vmax.f32 %v1700_v33, 0.0 }
 0x3ff   : > { %v1618_v19 = vmul.f32 %v2549_v9, %v1554_v27  ;;  %v1753_v3 = vpack.c.bf16 %v1733_v35, %v1731_v23  ;;  %v1619_v47 = vmul.f32 %v2549_v9, %v1555_v29  ;;  %v1660_v11 = vmul.f32 %v3709_v28, %v1617_v25 }
 0x400   : > { %v1659_v15 = vmul.f32 %v3706_v5, %v1616_v10  ;;  %v1752_v45 = vpack.c.bf16 %v1732_v21, %v1730_v57 }
 0x401   : > { %1958 = vmatprep.mubr.bf16.mxu0 %v1753_v3  ;;  %v1662_v50 = vmul.f32 %v3709_v28, %v1619_v47  ;;  %v1661_v20 = vmul.f32 %v3706_v5, %v1618_v19  ;;  %v1703_v51 = vadd.f32 %v3717_v46, %v1660_v11 }
 0x402   : > { %v1702_v40 = vadd.f32 %v3714_v55, %v1659_v15 }
 0x403   : > { %v1705_v30 = vadd.f32 %v3717_v46, %v1662_v50  ;;  %v1704_v24 = vadd.f32 %v3714_v55, %v1661_v20  ;;  %v1735_v16 = vmax.f32 %v1703_v51, 0.0  ;;  %1959 = vmatmul.mubr.bf16.gmra.mrb[52].mxu0 %v1752_v45 }
 0x404   : > { %v2551_v63 = vpop.eup %2550  ;;  %v1734_v49 = vmax.f32 %v1702_v40, 0.0 }
 0x405   : > { %v1737_v38 = vmax.f32 %v1705_v30, 0.0  ;;  %v1736_v13 = vmax.f32 %v1704_v24, 0.0  ;;  %v1621_v8 = vmul.f32 %v2551_v63, %v1557_v39  ;;  %v1620_v58 = vmul.f32 %v2551_v63, %v1556_v14 }
 0x406   : > { %v2553_v6 = vpop.eup %2552 }
 0x407   : > { %v1755_v18 = vpack.c.bf16 %v1737_v38, %v1735_v16  ;;  %v1754_v4 = vpack.c.bf16 %v1736_v13, %v1734_v49  ;;  %v1623_v52 = vmul.f32 %v2553_v6, %v1559_v42  ;;  %v1664_v59 = vmul.f32 %v3709_v28, %v1621_v8 }
 0x408   : > { %v1622_v22 = vmul.f32 %v2553_v6, %v1558_v44  ;;  %v1663_v54 = vmul.f32 %v3706_v5, %v1620_v58 }
 0x409   : > { %1966 = vmatprep.mubr.bf16.mxu1 %v1755_v18  ;;  %v1666_v17 = vmul.f32 %v3709_v28, %v1623_v52  ;;  %v1707_v36 = vadd.f32 %v3717_v46, %v1664_v59 }
 0x40a   : > { %1967 = vmatmul.mubr.bf16.vlgmr.msra.gmra.mrb[32].mxu1 %v1754_v4  ;;  %v1665_v0 = vmul.f32 %v3706_v5, %v1622_v22  ;;  %v1706_v56 = vadd.f32 %v3714_v55, %v1663_v54 }
 0x40b   : > { %v1709_v31 = vadd.f32 %v3717_v46, %v1666_v17  ;;  %v1739_v34 = vmax.f32 %v1707_v36, 0.0 }
 0x40c   : > { %v1708_v32 = vadd.f32 %v3714_v55, %v1665_v0  ;;  %v1738_v7 = vmax.f32 %v1706_v56, 0.0 }
 0x40d   : > { %v1741_v1 = vmax.f32 %v1709_v31, 0.0 }
 0x40e   : > { %v1740_v53 = vmax.f32 %v1708_v32, 0.0 }
 0x40f   : > { %v1757_v37 = vpack.c.bf16 %v1741_v1, %v1739_v34 }
 0x410   : > { %v1756_v62 = vpack.c.bf16 %v1740_v53, %v1738_v7 }
 0x411   : > { %1974 = vmatprep.mubr.bf16.mxu1 %v1757_v37 }
 0x412   : > { %1975 = vmatmul.mubr.bf16.gmra.mrb[36].mxu1 %v1756_v62 }
 0x4a7   : > { %v2236_v28 = vpop.f32.mrb[32].mxu0 }
 0x4a8   : > { %v2237_v60 = vpop.f32.mrb[33].mxu0 }
 0x4a9   : > { %v2238_v5 = vadd.f32 %v2237_v60, %v2236_v28  ;;  %v2239_v12 = vpop.f32.mrb[34].mxu0 }
 0x4aa   : > { %v2240_v48 = vpop.f32.mrb[35].mxu0 }
 0x4ab   : > { %v1921_v46 = vadd.f32 %v2238_v5, %v3889_v43  ;;  %v2241_v26 = vadd.f32 %v2240_v48, %v2239_v12 }
 0x4ad   : > { %1983 = vst [vmem:[%s3892_s26] sm:$0xff] %v1921_v46  ;;  %v1924_v55 = vadd.f32 %v2241_v26, %v3889_v43 }
 0x4af   : > { %1984 = vst [vmem:[%s3892_s26 + $0x8] sm:$0xff] %v1924_v55 }
 0x4b0   : > { %v2242_v2 = vpop.f32.mrb[36].mxu0 }
 0x4b1   : > { %v2243_v61 = vpop.f32.mrb[37].mxu0 }
 0x4b2   : > { %v2244_v27 = vadd.f32 %v2243_v61, %v2242_v2  ;;  %v2245_v29 = vpop.f32.mrb[38].mxu0 }
 0x4b3   : > { %v2246_v41 = vpop.f32.mrb[39].mxu0 }
 0x4b4   : > { %v1929_v10 = vadd.f32 %v2244_v27, %v3889_v43  ;;  %v2247_v23 = vadd.f32 %v2246_v41, %v2245_v29 }
 0x4b6   : > { %1985 = vst [vmem:[%s3892_s26 + $0x10] sm:$0xff] %v1929_v10  ;;  %v1932_v35 = vadd.f32 %v2247_v23, %v3889_v43 }
 0x4b8   : > { %1986 = vst [vmem:[%s3892_s26 + $0x18] sm:$0xff] %v1932_v35 }
 0x4bb   : > { %v2248_v33 = vpop.f32.mrb[40].mxu0 }
 0x4bc   : > { %v2249_v9 = vpop.f32.mrb[41].mxu0 }
 0x4bd   : > { %v2250_v57 = vadd.f32 %v2249_v9, %v2248_v33  ;;  %v2251_v25 = vpop.f32.mrb[42].mxu0 }
 0x4be   : > { %v2252_v19 = vpop.f32.mrb[43].mxu0 }
 0x4bf   : > { %v1937_v3 = vadd.f32 %v2250_v57, %v3889_v43  ;;  %v2253_v21 = vadd.f32 %v2252_v19, %v2251_v25 }
 0x4c1   : > { %1987 = vst [vmem:[%s3892_s26 + $0x20] sm:$0xff] %v1937_v3  ;;  %v1940_v47 = vadd.f32 %v2253_v21, %v3889_v43 }
 0x4c3   : > { %1988 = vst [vmem:[%s3892_s26 + $0x28] sm:$0xff] %v1940_v47 }
 0x4c5   : > { %v2254_v11 = vpop.f32.mrb[44].mxu0 }
 0x4c6   : > { %v2255_v15 = vpop.f32.mrb[45].mxu0 }
 0x4c7   : > { %v2256_v45 = vadd.f32 %v2255_v15, %v2254_v11  ;;  %v2257_v50 = vpop.f32.mrb[46].mxu0 }
 0x4c8   : > { %v2258_v20 = vpop.f32.mrb[47].mxu0 }
 0x4c9   : > { %v1945_v51 = vadd.f32 %v2256_v45, %v3889_v43  ;;  %v2259_v40 = vadd.f32 %v2258_v20, %v2257_v50 }
 0x4cb   : > { %1989 = vst [vmem:[%s3892_s26 + $0x30] sm:$0xff] %v1945_v51  ;;  %v1948_v14 = vadd.f32 %v2259_v40, %v3889_v43 }
 0x4cd   : > { %1990 = vst [vmem:[%s3892_s26 + $0x38] sm:$0xff] %v1948_v14 }
 0x4ce   : > { %v2260_v39 = vpop.f32.mrb[48].mxu0 }
 0x4cf   : > { %v2261_v30 = vpop.f32.mrb[49].mxu0 }
 0x4d0   : > { %v2262_v24 = vadd.f32 %v2261_v30, %v2260_v39  ;;  %v2263_v63 = vpop.f32.mrb[50].mxu0 }
 0x4d1   : > { %v2264_v42 = vpop.f32.mrb[51].mxu0 }
 0x4d2   : > { %v1953_v16 = vadd.f32 %v2262_v24, %v3889_v43  ;;  %v2265_v49 = vadd.f32 %v2264_v42, %v2263_v63 }
 0x4d4   : > { %1991 = vst [vmem:[%s3892_s26 + $0x40] sm:$0xff] %v1953_v16  ;;  %v1956_v38 = vadd.f32 %v2265_v49, %v3889_v43 }
 0x4d6   : > { %1992 = vst [vmem:[%s3892_s26 + $0x48] sm:$0xff] %v1956_v38  ;;  %v2266_v13 = vpop.f32.mrb[52].mxu0 }
 0x4d7   : > { %v2267_v8 = vpop.f32.mrb[53].mxu0 }
 0x4d8   : > { %v2268_v58 = vadd.f32 %v2267_v8, %v2266_v13  ;;  %v2269_v6 = vpop.f32.mrb[54].mxu0 }
 0x4d9   : > { %v2270_v44 = vpop.f32.mrb[55].mxu0 }
 0x4da   : > { %v1961_v18 = vadd.f32 %v2268_v58, %v3889_v43  ;;  %v2271_v4 = vadd.f32 %v2270_v44, %v2269_v6 }
 0x4dc   : > { %1993 = vst [vmem:[%s3892_s26 + $0x50] sm:$0xff] %v1961_v18  ;;  %v1964_v59 = vadd.f32 %v2271_v4, %v3889_v43 }
 0x4dd   : > { %v2272_v52 = vpop.f32.mrb[32].mxu1 }
 0x4de   : > { %v2273_v22 = vpop.f32.mrb[33].mxu1  ;;  %1994 = vst [vmem:[%s3892_s26 + $0x58] sm:$0xff] %v1964_v59 }
 0x4df   : > { %v2274_v54 = vadd.f32 %v2273_v22, %v2272_v52  ;;  %v2275_v17 = vpop.f32.mrb[34].mxu1 }
 0x4e0   : > { %v2276_v36 = vpop.f32.mrb[35].mxu1 }
 0x4e1   : > { %v1969_v0 = vadd.f32 %v2274_v54, %v3889_v43  ;;  %v2277_v56 = vadd.f32 %v2276_v36, %v2275_v17 }
 0x4e3   : > { %1995 = vst [vmem:[%s3892_s26 + $0x60] sm:$0xff] %v1969_v0  ;;  %v1972_v31 = vadd.f32 %v2277_v56, %v3889_v43 }
 0x4e5   : > { %1996 = vst [vmem:[%s3892_s26 + $0x68] sm:$0xff] %v1972_v31  ;;  %v2278_v32 = vpop.f32.mrb[36].mxu1 }
 0x4e6   : > { %v2279_v34 = vpop.f32.mrb[37].mxu1 }
 0x4e7   : > { %v2280_v1 = vadd.f32 %v2279_v34, %v2278_v32  ;;  %v2281_v7 = vpop.f32.mrb[38].mxu1 }
 0x4e8   : > { %v2282_v53 = vpop.f32.mrb[39].mxu1 }
 0x4e9   : > { %v1977_v37 = vadd.f32 %v2280_v1, %v3889_v43  ;;  %v2283_v62 = vadd.f32 %v2282_v53, %v2281_v7 }
 0x4eb   : > { %1997 = vst [vmem:[%s3892_s26 + $0x70] sm:$0xff] %v1977_v37  ;;  %v1980_v28 = vadd.f32 %v2283_v62, %v3889_v43 }
 0x4ed   : > { %1998 = vst [vmem:[%s3892_s26 + $0x78] sm:$0xff] %v1980_v28 }
 0x4ee   : > { %2709 = shalt.err (!%p2706_p13)
}
 0x4ef   : > { %s2710_s13 = scalar_lea.hbm %s3927_s7, 2048  ;;  %s2714_s23 = scalar_lea.hbm %s3981_s5, 4096 }
 0x4f0   : > { %p2711_p9 = scmp.ne.s32.totalorder %s3927_s7, %s2710_s13  ;;  %p2715_p6 = scmp.lt.u32.totalorder %s3927_s7, %s3981_s5 }
 0x4f1   : > { %p2716_p4 = scmp.lt.u32.totalorder %s2714_s23, %s2710_s13  ;;  %p2718_p10 = scmp.lt.u32.totalorder %s2710_s13, %s3927_s7 }
 0x4f2   : > { %p2712_p0 = pnand %p2711_p9, %p2990_p3 }
 0x4f3   : > { %p2717_p8 = por %p2716_p4, %p2715_p6 }
 0x4f4   : > { %p2713_p11 = pneg %p2712_p0 }
 0x4f5   : > { %p2719_p5 = por %p2718_p10, %p2717_p8 }
 0x4f7   : > { %p2720_p7 = pnand %p2719_p5, %p2713_p11 }
 0x4f9   : > { %2723 = shalt.err (!%p2720_p7)
}
 0x4fa   : > { %s2783_s14 = smov 128   ;;  %s2784_s6 = smov 8  }
 0x4fb   : > { %2318 = dma.vmem_to_hbm [thread:$0]  (%p2990_p3), %s3929_s15, 2048, %s3927_s7, %s2000_s22, %s2783_s14, %s2783_s14, %s2784_s6  }
 0x4fc PF: > { %s2028_s17 = sand.u32 1, %s2758_s18   ;;  %p4008_p12 = scmp.ne.s32.totalorder %s3989_s25, 0 }
 0x4fd   : > { %p4009_p1 = scmp.ge.s32.totalorder %s2770_s21, 2  ;;  %s2029_s16 = scalar_lea.sflag [#allocation4], %s2028_s17 }
 0x4ff   : > { %p2338_p2 = pnand %p4009_p1, %p4008_p12 }
 0x501   : > { %2753 = dma.done.wait (!%p2338_p2), %s2029_s16, 2048  }
 0x502   : > { %2755 = vsyncadd (!%p2338_p2), %s2029_s16, 4294965248  ;;  %p20_p13 = scmp.ge.s32.totalorder %s2977_s12, 4   ;;  %s4010_s18 = smov %s2762_s19 }
 0x503   : > { %s4011_s19 = smov %s2766_s20  ;;  %s4012_s20 = smov %s2986_s8 }
 0x504   : > { %s4013_s21 = smov %s2977_s12  ;;  %22 = sbr.rel (!%p20_p13) target bundleno = 7 (0x7), region = 106 }
 0x50b   :  { %2034 = vsyncpa [#allocation3], 1 }
 0x50c   :  { %2036 = vsyncpa [#allocation3 + $0x1], 1 }
 0x50d   :  { %2037 = vsyncpa [#allocation6], 1 }
 0x50e   :  { %2038 = vsyncpa [#allocation9], 1 }
 0x50f   :  { %2039 = vsyncpa [#allocation4], 1 }
 0x510   :  { %2041 = vsyncpa [#allocation4 + $0x1], 1 }

</bundles_post_ra>
